<compile_context>
chip_gen: v6e
topology: v6e:2x2x1
jax: 0.10.0
libtpu: 0.0.40
codegen_flags: <defaults>
</compile_context>

<pallas_src>
import jax
import jax.numpy as jnp
from jax import lax
from jax.experimental import pallas as pl
from jax.experimental.pallas import tpu as pltpu

# Small, tile-friendly synthetic sizes (original: context_size=256, embd_size=384).
CONTEXT_SIZE = 128
EMBD_SIZE = 128
HEAD_SIZE = 64


def _head_kernel(x_ref, wqkv_ref, o_ref):
    # x_ref block: (BB, T, E) bf16; wqkv_ref: (E, 3H) bf16;
    # o_ref block: (BB//2, T, 2H) f32  (lane-dense: 2H = 128)
    BB, T, E = x_ref.shape
    H = wqkv_ref.shape[1] // 3
    half = BB // 2

    # --- fused K|Q|V projection: one wide bf16 matmul on flattened (BB*T, E) ---
    x2d = x_ref[...].reshape(BB * T, E)                               # bf16 (BB*T, E)
    kqv = jnp.dot(x2d, wqkv_ref[...],
                  preferred_element_type=jnp.float32)                 # f32 (BB*T, 3H)
    kqv = kqv.reshape(BB, T, 3 * H)
    k = kqv[:, :, :H].astype(jnp.bfloat16)                            # (BB, T, H)
    q = kqv[:, :, H:2 * H].astype(jnp.bfloat16)   # 1/sqrt(H) folded into weight
    v = kqv[:, :, 2 * H:].astype(jnp.bfloat16)

    # --- scores: batched q @ k^T (bf16 operands, f32 accumulate) ---
    s = lax.dot_general(q, k,
                        dimension_numbers=(((2,), (2,)), ((0,), (0,))),
                        preferred_element_type=jnp.float32)           # (BB, T, T)

    # Causal mask: tril == 0 -> -inf (diagonal unmasked, so no NaN rows).
    # Recomputed per step on purpose (safe under megacore grid sharding).
    row = lax.broadcasted_iota(jnp.int32, (T, T), 0)
    col = lax.broadcasted_iota(jnp.int32, (T, T), 1)
    s = jnp.where((col <= row)[None, :, :], s, -jnp.inf)

    # Numerically stable softmax; denominator reciprocal on the (idle) EUP.
    s = s - jnp.max(s, axis=-1, keepdims=True)
    p = jnp.exp(s)
    p = p * pl.reciprocal(jnp.sum(p, axis=-1, keepdims=True), approx=True)

    # Dropout: eval-mode identity.

    # --- output: batched p @ v (bf16 operands, f32 accumulate) ---
    out = lax.dot_general(p.astype(jnp.bfloat16), v,
                          dimension_numbers=(((2,), (1,)), ((0,), (0,))),
                          preferred_element_type=jnp.float32)         # (BB, T, H)

    # Lane-dense store: pack batch pair (j, j + BB//2) along the lane axis,
    # giving a 2H = 128-lane output row (unmasked vst) instead of H = 64.
    packed = jnp.concatenate([out[:half], out[half:]], axis=-1)       # (BB//2, T, 2H)
    o_ref[...] = packed.astype(o_ref.dtype)


def prepare_head_params(w_key, w_query, w_value):
    """One-time param prep: fuse K|Q|V weights, fold the attention scale, cast bf16."""
    H = w_key.shape[1]
    scale = jnp.float32(H) ** jnp.float32(-0.5)
    w_qkv = jnp.concatenate([w_key, w_query * scale, w_value], axis=1)  # (E, 3H)
    return w_qkv.astype(jnp.bfloat16)


def _pick_bb(B):
    # Largest even BB that still leaves >= 4 grid steps (>= 2 per TC on v7x).
    for bb in (16, 8, 4, 2):
        if B % bb == 0 and B // bb >= 4:
            return bb
    return 2  # B is even (wrapper pads), so this always divides


def head_forward(x, w_qkv):
    """x: (B, T, E) float32; w_qkv: (E, 3H) bf16 from prepare_head_params. Returns (B, T, H) f32."""
    B0, T, E = x.shape
    H = w_qkv.shape[1] // 3
    assert T == CONTEXT_SIZE and E == EMBD_SIZE and H == HEAD_SIZE

    # Pad batch to even so outputs can be lane-packed in pairs.
    B = B0 + (B0 % 2)
    if B != B0:
        x = jnp.concatenate([x, jnp.zeros((1, T, E), x.dtype)], axis=0)

    BB = _pick_bb(B)
    half = BB // 2
    x_bf16 = x.astype(jnp.bfloat16)   # halve input HBM traffic; MXU is bf16-native

    packed = pl.pallas_call(
        _head_kernel,
        out_shape=jax.ShapeDtypeStruct((B // 2, T, 2 * H), jnp.float32),
        grid_spec=pltpu.PrefetchScalarGridSpec(
            num_scalar_prefetch=0,
            grid=(B // BB,),
            in_specs=[
                pl.BlockSpec((BB, T, E), lambda b: (b, 0, 0)),
                pl.BlockSpec((E, 3 * H), lambda b: (0, 0)),
            ],
            out_specs=pl.BlockSpec((half, T, 2 * H), lambda b: (b, 0, 0)),
        ),
        compiler_params=pltpu.CompilerParams(
            dimension_semantics=("parallel",),
            # Per-step VMEM << 32 MiB scoped default even on v7x; at production
            # shapes (T=256, E=384, fused heads) re-budget and set vmem_limit_bytes.
        ),
    )(x_bf16, w_qkv)

    # Un-pack the lane-packed pairs: packed[g*half + j, t, c*H:(c+1)*H]
    # holds batch g*BB + c*half + j.
    out = packed.reshape(B // BB, half, T, 2, H)
    out = out.transpose(0, 3, 1, 2, 4).reshape(B, T, H)
    return out[:B0]


def head_reference(x, w_key, w_query, w_value):
    k = x @ w_key
    q = x @ w_query
    v = x @ w_value
    s = (q @ jnp.swapaxes(k, -2, -1)) * (HEAD_SIZE ** -0.5)
    t = x.shape[1]
    mask = jnp.tril(jnp.ones((t, t), dtype=bool))
    s = jnp.where(mask, s, -jnp.inf)
    p = jax.nn.softmax(s, axis=-1)
    return p @ v


if __name__ == "__main__":
    key = jax.random.PRNGKey(0)
    kx, kk, kq, kv = jax.random.split(key, 4)

    B = 8  # grid = B/BB = 4 steps -> >= 2 steps per TensorCore on v7x
    x = jax.random.normal(kx, (B, CONTEXT_SIZE, EMBD_SIZE), dtype=jnp.float32)
    # Deterministic parameter init (mimicking nn.Linear's uniform(-1/sqrt(in), 1/sqrt(in))).
    bound = 1.0 / (EMBD_SIZE ** 0.5)
    w_key = jax.random.uniform(kk, (EMBD_SIZE, HEAD_SIZE), jnp.float32, -bound, bound)
    w_query = jax.random.uniform(kq, (EMBD_SIZE, HEAD_SIZE), jnp.float32, -bound, bound)
    w_value = jax.random.uniform(kv, (EMBD_SIZE, HEAD_SIZE), jnp.float32, -bound, bound)

    w_qkv = prepare_head_params(w_key, w_query, w_value)  # hoisted out of forward

    out = head_forward(x, w_qkv)
    out = jax.block_until_ready(out)

    ref = head_reference(x, w_key, w_query, w_value)
    assert out.shape == (B, CONTEXT_SIZE, HEAD_SIZE)
    # Tolerance 2e-2: bf16 MXU operands (f32 accumulation) plus the approximate
    # EUP reciprocal in the softmax denominator.
    assert jnp.allclose(out, ref, atol=2e-2, rtol=2e-2), "mismatch vs reference"

    print("KERNEL_OK")
</pallas_src>

<mosaic_0001>
module attributes {stable_mosaic.version = 11 : i64} {
  func.func @_head_kernel(%arg0: i32, %arg1: memref<2x128x128xbf16, #tpu.memory_space<vmem>>, %arg2: memref<128x192xbf16, #tpu.memory_space<vmem>>, %arg3: memref<1x128x128xf32, #tpu.memory_space<vmem>>) attributes {dimension_semantics = [#tpu.dimension_semantics<parallel>], iteration_bounds = array<i64: 4>, scalar_prefetch = 0 : i64, scratch_operands = 0 : i64, tpu.core_type = #tpu.core_type<tc>, window_params = [{transform_indices = @transform_0, window_bounds = array<i64: 2, 128, 128>}, {pipeline_mode = #tpu.pipeline_mode<synchronous>, transform_indices = @transform_1, window_bounds = array<i64: 128, 192>}, {transform_indices = @transform_2, window_bounds = array<i64: 1, 128, 128>}]} {
    %c0 = arith.constant 0 : index
    %c0_0 = arith.constant 0 : index
    %c0_1 = arith.constant 0 : index
    %0 = vector.load %arg1[%c0, %c0_0, %c0_1] : memref<2x128x128xbf16, #tpu.memory_space<vmem>>, vector<2x128x128xbf16>
    %1 = vector.shape_cast %0 : vector<2x128x128xbf16> to vector<256x128xbf16>
    %c0_2 = arith.constant 0 : index
    %c0_3 = arith.constant 0 : index
    %2 = vector.load %arg2[%c0_2, %c0_3] : memref<128x192xbf16, #tpu.memory_space<vmem>>, vector<128x192xbf16>
    %cst = arith.constant dense<0.000000e+00> : vector<256x192xf32>
    %3 = tpu.matmul %1, %2, %cst {dimension_numbers = #tpu.dot_dimension_numbers<[1], [0], [0], [1], [0, 0, 1, 1], [], []>} : vector<256x128xbf16>, vector<128x192xbf16>, vector<256x192xf32> -> vector<256x192xf32>
    %4 = vector.shape_cast %3 : vector<256x192xf32> to vector<2x128x192xf32>
    %5 = vector.extract_strided_slice %4 {offsets = [0, 0, 0], sizes = [2, 128, 64], strides = [1, 1, 1]} : vector<2x128x192xf32> to vector<2x128x64xf32>
    %6 = arith.truncf %5 : vector<2x128x64xf32> to vector<2x128x64xbf16>
    %7 = vector.extract_strided_slice %4 {offsets = [0, 0, 64], sizes = [2, 128, 64], strides = [1, 1, 1]} : vector<2x128x192xf32> to vector<2x128x64xf32>
    %8 = arith.truncf %7 : vector<2x128x64xf32> to vector<2x128x64xbf16>
    %9 = vector.extract_strided_slice %4 {offsets = [0, 0, 128], sizes = [2, 128, 64], strides = [1, 1, 1]} : vector<2x128x192xf32> to vector<2x128x64xf32>
    %10 = arith.truncf %9 : vector<2x128x64xf32> to vector<2x128x64xbf16>
    %cst_4 = arith.constant dense<0.000000e+00> : vector<2x128x128xf32>
    %11 = tpu.matmul %8, %6, %cst_4 {dimension_numbers = #tpu.dot_dimension_numbers<[2], [2], [1], [1], [0, 0, 0, 1, 1, 1], [0], [0]>} : vector<2x128x64xbf16>, vector<2x128x64xbf16>, vector<2x128x128xf32> -> vector<2x128x128xf32>
    %12 = tpu.iota {dimensions = array<i32: 0>} : vector<128x128xi32>
    %13 = tpu.iota {dimensions = array<i32: 1>} : vector<128x128xi32>
    %14 = arith.cmpi sle, %13, %12 : vector<128x128xi32>
    %15 = vector.shape_cast %14 : vector<128x128xi1> to vector<1x128x128xi1>
    %cst_5 = arith.constant 0xFF800000 : f32
    %16 = vector.shape_cast %15 : vector<1x128x128xi1> to vector<1x128x128xi1>
    %17 = vector.broadcast %16 : vector<1x128x128xi1> to vector<2x128x128xi1>
    %18 = vector.broadcast %cst_5 : f32 to vector<2x128x128xf32>
    %19 = arith.select %17, %11, %18 : vector<2x128x128xi1>, vector<2x128x128xf32>
    %cst_6 = arith.constant dense<0xFF800000> : vector<2x128xf32>
    %20 = vector.multi_reduction <maximumf>, %19, %cst_6 [2] : vector<2x128x128xf32> to vector<2x128xf32>
    %21 = vector.shape_cast %20 : vector<2x128xf32> to vector<2x128x1xf32>
    %22 = vector.broadcast %21 : vector<2x128x1xf32> to vector<2x128x128xf32>
    %23 = arith.subf %19, %22 : vector<2x128x128xf32>
    %24 = math.exp %23 : vector<2x128x128xf32>
    %cst_7 = arith.constant dense<0.000000e+00> : vector<2x128xf32>
    %25 = vector.multi_reduction <add>, %24, %cst_7 [2] : vector<2x128x128xf32> to vector<2x128xf32>
    %26 = vector.shape_cast %25 : vector<2x128xf32> to vector<2x128x1xf32>
    %27 = tpu.reciprocal %26 {approx = true} : vector<2x128x1xf32> -> vector<2x128x1xf32>
    %28 = vector.broadcast %27 : vector<2x128x1xf32> to vector<2x128x128xf32>
    %29 = arith.mulf %24, %28 : vector<2x128x128xf32>
    %30 = arith.truncf %29 : vector<2x128x128xf32> to vector<2x128x128xbf16>
    %cst_8 = arith.constant dense<0.000000e+00> : vector<2x128x64xf32>
    %31 = tpu.matmul %30, %10, %cst_8 {dimension_numbers = #tpu.dot_dimension_numbers<[2], [1], [1], [2], [0, 0, 0, 1, 1, 2], [0], [0]>} : vector<2x128x128xbf16>, vector<2x128x64xbf16>, vector<2x128x64xf32> -> vector<2x128x64xf32>
    %32 = vector.extract_strided_slice %31 {offsets = [0, 0, 0], sizes = [1, 128, 64], strides = [1, 1, 1]} : vector<2x128x64xf32> to vector<1x128x64xf32>
    %33 = vector.extract_strided_slice %31 {offsets = [1, 0, 0], sizes = [1, 128, 64], strides = [1, 1, 1]} : vector<2x128x64xf32> to vector<1x128x64xf32>
    %34 = tpu.concatenate %32, %33 in 2 : vector<1x128x64xf32>, vector<1x128x64xf32> -> vector<1x128x128xf32>
    %c0_9 = arith.constant 0 : index
    %c0_10 = arith.constant 0 : index
    %c0_11 = arith.constant 0 : index
    %35 = vector.load %arg3[%c0_9, %c0_10, %c0_11] : memref<1x128x128xf32, #tpu.memory_space<vmem>>, vector<1x128x128xf32>
    tpu.vector_store %arg3[%c0_9, %c0_10, %c0_11], %34 {strides = array<i32>} : memref<1x128x128xf32, #tpu.memory_space<vmem>>, vector<1x128x128xf32>,
    return
  }
  func.func @transform_0(%arg0: i32) -> (i32, i32, i32) {
    %c0_i32 = arith.constant 0 : i32
    %c0_i32_0 = arith.constant 0 : i32
    %c0_i32_1 = arith.constant 0 : i32
    return %arg0, %c0_i32, %c0_i32_0 : i32, i32, i32
  }
  func.func @transform_1(%arg0: i32) -> (i32, i32) {
    %c0_i32 = arith.constant 0 : i32
    %c0_i32_0 = arith.constant 0 : i32
    %c0_i32_1 = arith.constant 0 : i32
    return %c0_i32, %c0_i32_0 : i32, i32
  }
  func.func @transform_2(%arg0: i32) -> (i32, i32, i32) {
    %c0_i32 = arith.constant 0 : i32
    %c0_i32_0 = arith.constant 0 : i32
    %c0_i32_1 = arith.constant 0 : i32
    return %arg0, %c0_i32, %c0_i32_0 : i32, i32, i32
  }
}

</mosaic_0001>

<bundles_post_ra>
// kernel: tpu_custom_call.1
= control target key start
LH: loop header
LB: loop body
LE: loop exit
PB: predicated region body
PF: predicated region fallthrough
CT: control target
= control target key end

     0   :  { %7 = vsyncpa [#allocation3], 0  ;;  %s3221_s0 = inlined_call_operand.hbm [shape: bf16[8,128,128], index: 0, kind: input, shape index: {}]   ;;  %s3222_s1 = inlined_call_operand.vmem [shape: bf16[128,192], index: 1, kind: input, shape index: {}]   ;;  %s3223_s2 = inlined_call_operand.hbm [shape: f32[4,128,128], index: 2, kind: output, shape index: {}]  }
   0x1   :  { %9 = vsyncpa [#allocation3 + $0x1], 0 }
   0x2   :  { %10 = vsyncpa [#allocation4], 0 }
   0x3   :  { %12 = vsyncpa [#allocation4 + $0x1], 0  ;;  %s2344_s9 = smov 0   ;;  %s2346_s10 = smov 0  }
   0x4   :  { %s2348_s11 = smov 0   ;;  %s2350_s12 = smov 0  }
   0x5 LB: > { %s2365_s13 = sadd.s32 4294967295, %s2319_s12   ;;  %s1733_s14 = sadd.s32 4294967294, %s2319_s12   ;;  %s2319_s12 = sphi %s2350_s12, %s3254_s12   ;;  %s2315_s11 = sphi %s2348_s11, %s3253_s11   ;;  %s2311_s10 = sphi %s2346_s10, %s3252_s10   ;;  %s2307_s9 = sphi %s2344_s9, %s3251_s9  }
   0x6   : > { %s2369_s15 = sadd.s32 1, %s2319_s12   ;;  %s25_s16 = sadd.s32 1, %s2315_s11 }
   0x7   : > { %s22_s17 = ssub.s32 %s2319_s12, %s2369_s15  ;;  %p32_p0 = scmp.ne.s32.totalorder %s2315_s11, %s2311_s10 }
   0x8   : > { %p23_p1 = scmp.eq.s32.totalorder %s22_s17, 0  ;;  %p33_p2 = scmp.eq.s32.totalorder %s2319_s12, 0 }
   0x9   : > { %p38_p3 = scmp.ne.s32.totalorder %s2311_s10, %s2307_s9  ;;  %p39_p4 = scmp.eq.s32.totalorder %s2365_s13, 0 }
   0xa   : > { %s2381_s18 = scalar_select %p23_p1, %s2315_s11, %s25_s16  }
   0xb   : > { %p2383_p5 = por %p33_p2, %p32_p0  ;;  %p2387_p6 = por %p39_p4, %p38_p3 }
   0xc   : > { %p83_p7 = scmp.eq.s32.totalorder %s2365_s13, 3  ;;  %p89_p8 = scmp.eq.s32.totalorder %s1733_s14, 3 }
   0xd   : > { %s3228_s20 = scalar_select %p2387_p6, 1, 0 }
   0xe   : > { %p2019_p9 = scmp.lt.s32.totalorder %s2319_s12, 4  ;;  %p2393_p10 = por %p83_p7, %p32_p0 }
   0xf   : > { %p2397_p11 = por %p89_p8, %p38_p3  ;;  %s112_s23 = sand.u32 1, %s2315_s11  }
  0x10   : > { %s3229_s21 = scalar_select %p2393_p10, 1, 0 }
  0x11   : > { %s3230_s22 = scalar_select %p2397_p11, 1, 0 }
  0x12   : > { %s1797_s24 = sshll.u32 %s2319_s12, 11  ;;  %s1736_s25 = sshll.u32 %s112_s23, 7 }
  0x13   : > { %s2406_s28 = scalar_lea.hbm %s3221_s0, %s1797_s24  ;;  %s116_s29 = scalar_lea.vmem [#allocation2], %s1736_s25 }
  0x14   : > { %s124_s30 = sshll.u32 %s116_s29, 4  ;;  %p2410_p12 = pnand %p2019_p9, %p2383_p5  ;;  %s2414_s30 = int_to_ptr.vmem [resolvable:$true] %s124_s30 }
  0x15   : > { %s2416_s4 = scalar_lea.sflag [#allocation3], %s112_s23  ;;  %s2227_s5 = scalar_lea.hbm %s2406_s28, 2048 }
  0x16   : > { %p2228_p13 = scmp.ne.s32.totalorder %s2406_s28, %s2227_s5  ;;  %p2229_p0 = pneg %p2410_p12 }
  0x17   : > { %s2232_s8 = scalar_lea.hbm %s3221_s0, 8192  ;;  %p2233_p3 = scmp.lt.s32.totalorder %s2406_s28, %s3221_s0 }
  0x18   : > { %p2230_p1 = pnand %p2229_p0, %p2228_p13  ;;  %p2234_p4 = scmp.lt.s32.totalorder %s2232_s8, %s2227_s5 }
  0x1a   : > { %p2231_p2 = pneg %p2230_p1  ;;  %p2235_p5 = por %p2234_p4, %p2233_p3 }
  0x1c   : > { %p2236_p7 = pnand %p2235_p5, %p2231_p2 }
  0x1e   : > { %2239 = shalt.err (!%p2236_p7)
}
  0x1f   : > { %s2240_s17 = scalar_lea.vmem %s2414_s30, 2048  ;;  %s2321_s19 = smov [#allocation2]  }
  0x20   : > { %p2241_p8 = scmp.ne.s32.totalorder %s2414_s30, %s2240_s17  ;;  %s2245_s23 = sshll.u32 %s2321_s19, 4  ;;  %s2246_s23 = int_to_ptr.vmem [resolvable:$false] %s2245_s23 }
  0x21   : > { %s2247_s24 = scalar_lea.vmem %s2246_s23, 4096  ;;  %p2248_p1 = scmp.lt.s32.totalorder %s2414_s30, %s2246_s23 }
  0x22   : > { %p2243_p9 = pnand %p2241_p8, %p2229_p0  ;;  %p2249_p11 = scmp.lt.s32.totalorder %s2247_s24, %s2240_s17 }
  0x24   : > { %p2244_p13 = pneg %p2243_p9  ;;  %p2250_p10 = por %p2249_p11, %p2248_p1 }
  0x26   : > { %p2251_p6 = pnand %p2250_p10, %p2244_p13 }
  0x28   : > { %2254 = shalt.err (!%p2251_p6)
}
  0x29   : > { %s2322_s25 = smov 64   ;;  %s2323_s26 = smov 4  }
  0x2a   : > { %2014 = dma.hbm_to_vmem [thread:$0]  (!%p2410_p12), %s2406_s28, 2048, %s2414_s30, %s2416_s4, %s2322_s25, %s2322_s25, %s2323_s26  }
  0x2b   : > { %p1740_p0 = scmp.ge.s32.totalorder %s2319_s12, 1  ;;  %p132_p2 = scmp.lt.s32.totalorder %s2319_s12, 5 }
  0x2d   : > { %p133_p3 = pnand %p1740_p0, %p132_p2 }
  0x2e   : > { %s2440_s27 = sand.u32 (!%p133_p3), 1, %s2311_s10   ;;  %p3232_p6 = scmp.ne.s32.totalorder (!%p133_p3), %s3228_s20, 0 }
  0x2f   : > { %136 = sbr.rel (%p133_p3) target bundleno = 1370 (0x55a), region = 28  ;;  %s1741_s29 = sshll.u32 (!%p133_p3), %s2440_s27, 7 }
  0x30   : > { %s139_s5 = scalar_lea.sflag (!%p133_p3), [#allocation3], %s2440_s27  ;;  %s2446_s6 = scalar_lea.vmem (!%p133_p3), [#allocation2], %s1741_s29 }
  0x34   : > { %2298 = dma.done.wait (%p3232_p6), %s139_s5, 2048  }
  0x35   : > { %2300 = vsyncadd (%p3232_p6), %s139_s5, 4294965248  ;;  %v2324_v0 = vmov 0   ;;  %v2059_v1 = vld [vmem:[%s3222_s1 + $0x74] ss:$8 sps:$4 sm:$0xff]   ;;  %v2061_v2 = vld [vmem:[%s3222_s1 + $0x70] ss:$8 sps:$4 sm:$0xff]  }
  0x36   : > { %421 = vmatprep.mubr.bf16.mxu0 %v2324_v0  ;;  %389 = vmatprep.subr.bf16.mxu0 %v2059_v1  ;;  %v2062_v3 = vld [vmem:[%s3222_s1 + $0x64] ss:$8 sps:$4 sm:$0xff]   ;;  %v2064_v4 = vld [vmem:[%s3222_s1 + $0x60] ss:$8 sps:$4 sm:$0xff]   ;;  %v2065_v5 = vld [vmem:[%s3222_s1 + $0x54] ss:$8 sps:$4 sm:$0xff]  }
  0x37   : > { %390 = vmatpush1.bf16.msra.mxu0 %v2061_v2  ;;  %v2067_v6 = vld [vmem:[%s3222_s1 + $0x50] ss:$8 sps:$4 sm:$0xff]   ;;  %v2068_v7 = vld [vmem:[%s3222_s1 + $0x44] ss:$8 sps:$4 sm:$0xff]   ;;  %v2070_v8 = vld [vmem:[%s3222_s1 + $0x40] ss:$8 sps:$4 sm:$0xff]  }
  0x38   : > { %391 = vmatprep.subr.bf16.mxu0 %v2062_v3  ;;  %v2071_v9 = vld [vmem:[%s3222_s1 + $0x34] ss:$8 sps:$4 sm:$0xff]   ;;  %v2073_v10 = vld [vmem:[%s3222_s1 + $0x30] ss:$8 sps:$4 sm:$0xff]   ;;  %v2074_v11 = vld [vmem:[%s3222_s1 + $0x24] ss:$8 sps:$4 sm:$0xff]  }
  0x39   : > { %v2076_v12 = vld [vmem:[%s3222_s1 + $0x20] ss:$8 sps:$4 sm:$0xff]   ;;  %v2077_v13 = vld [vmem:[%s3222_s1 + $0x14] ss:$8 sps:$4 sm:$0xff]   ;;  %v2079_v14 = vld [vmem:[%s3222_s1 + $0x10] ss:$8 sps:$4 sm:$0xff]  }
  0x3a   : > { %v2080_v15 = vld [vmem:[%s3222_s1 + $0x4] ss:$8 sps:$4 sm:$0xff]   ;;  %v2082_v16 = vld [vmem:[%s3222_s1] ss:$8 sps:$4 sm:$0xff]   ;;  %v2085_v19 = vld [vmem:[%s2446_s6 + $0x10] sm:$0xff]   ;;  %s2325_s28 = smov 64  }
  0x3b   : > { %392 = vmatpush1.bf16.msra.mxu0 %v2064_v4  ;;  %v2083_v17 = vld [vmem:[%s2446_s6] sm:$0xff]   ;;  %v2084_v18 = vld [vmem:[%s2446_s6 + $0x8] sm:$0xff]   ;;  %v2086_v20 = vld [vmem:[%s2446_s6 + $0x18] sm:$0xff]   ;;  %vm3226_vm0 = vcmask 523264   ;;  %p3249_p11 = scmp.ne.s32.totalorder %s3229_s21, 0  ;;  %s2326_s14 = smov [#allocation5]  }
  0x3c   : > { %393 = vmatprep.subr.bf16.mxu0 %v2065_v5  ;;  %v2087_v21 = vld [vmem:[%s2446_s6 + $0x20] sm:$0xff]   ;;  %v2088_v22 = vld [vmem:[%s2446_s6 + $0x28] sm:$0xff]   ;;  %v2089_v23 = vld [vmem:[%s2446_s6 + $0x30] sm:$0xff]   ;;  %s2259_s20 = sshll.u32 %s2326_s14, 4  ;;  %s2260_s20 = int_to_ptr.vmem [resolvable:$false] %s2259_s20 }
  0x3d   : > { %v2090_v24 = vld [vmem:[%s2446_s6 + $0x38] sm:$0xff]   ;;  %v2091_v25 = vld [vmem:[%s2446_s6 + $0x40] sm:$0xff]   ;;  %v2092_v26 = vld [vmem:[%s2446_s6 + $0x48] sm:$0xff]   ;;  %s2261_s16 = scalar_lea.vmem %s2260_s20, 4096 }
  0x3e   : > { %v2093_v27 = vld [vmem:[%s2446_s6 + $0x50] sm:$0xff]   ;;  %v2094_v28 = vld [vmem:[%s2446_s6 + $0x58] sm:$0xff]   ;;  %v2095_v29 = vld [vmem:[%s2446_s6 + $0x60] sm:$0xff]  }
  0x3f   : > { %394 = vmatpush1.bf16.msra.mxu0 %v2067_v6  ;;  %v2096_v30 = vld [vmem:[%s2446_s6 + $0x68] sm:$0xff]   ;;  %v2097_v31 = vld [vmem:[%s2446_s6 + $0x70] sm:$0xff]   ;;  %v2098_v32 = vld [vmem:[%s2446_s6 + $0x78] sm:$0xff]   ;;  %s3139_s6 = scalar_lea.vmem [#allocation5], %s1741_s29  ;;  %s1798_s29 = sshll.u32 %s2365_s13, 11 }
  0x40   : > { %395 = vmatprep.subr.bf16.mxu0 %v2068_v7  ;;  %s1660_s30 = sshll.u32 %s3139_s6, 4  ;;  %s3175_s7 = scalar_lea.hbm %s3223_s2, %s1798_s29  ;;  %s3177_s30 = int_to_ptr.vmem [resolvable:$true] %s1660_s30 }
  0x41   : > { %s1647_s13 = scalar_lea.sflag [#allocation4], %s2440_s27  ;;  %s2255_s8 = scalar_lea.vmem %s3177_s30, 2048 }
  0x42   : > { %p2256_p10 = scmp.ne.s32.totalorder %s3177_s30, %s2255_s8  ;;  %p2262_p5 = scmp.lt.s32.totalorder %s3177_s30, %s2260_s20 }
  0x43   : > { %396 = vmatpush1.bf16.msra.mxu0 %v2070_v8  ;;  %p2263_p7 = scmp.lt.s32.totalorder %s2261_s16, %s2255_s8 }
  0x44   : > { %397 = vmatprep.subr.bf16.mxu0 %v2071_v9  ;;  %p2257_p12 = pnand %p2256_p10, %p3249_p11 }
  0x45   : > { %p2264_p8 = por %p2263_p7, %p2262_p5 }
  0x46   : > { %p2258_p4 = pneg %p2257_p12 }
  0x47   : > { %398 = vmatpush1.bf16.msra.mxu0 %v2073_v10 }
  0x48   : > { %399 = vmatprep.subr.bf16.mxu0 %v2074_v11  ;;  %p2265_p9 = pnand %p2264_p8, %p2258_p4 }
  0x4b   : > { %400 = vmatpush1.bf16.msra.mxu0 %v2076_v12 }
  0x4c   : > { %401 = vmatprep.subr.bf16.mxu0 %v2077_v13 }
  0x4f   : > { %402 = vmatpush1.bf16.msra.mxu0 %v2079_v14 }
  0x50   : > { %403 = vmatprep.subr.bf16.mxu0 %v2080_v15 }
  0x53   : > { %404 = vmatpush1.bf16.msra.mxu0 %v2082_v16 }
  0x56   : > { %422 = vmatmul.mubr.bf16.vlgmr.msra.gmra.mxu0 %v2083_v17 }
  0x57   : > { %431 = vmatprep.mubr.bf16.mxu0 %v2324_v0 }
  0x5e   : > { %432 = vmatmul.mubr.bf16.gmra.mxu0 %v2084_v18 }
  0x5f   : > { %441 = vmatprep.mubr.bf16.mxu0 %v2324_v0 }
  0x66   : > { %442 = vmatmul.mubr.bf16.gmra.mxu0 %v2085_v19 }
  0x67   : > { %451 = vmatprep.mubr.bf16.mxu0 %v2324_v0 }
  0x6e   : > { %452 = vmatmul.mubr.bf16.gmra.mxu0 %v2086_v20 }
  0x6f   : > { %461 = vmatprep.mubr.bf16.mxu0 %v2324_v0 }
  0x76   : > { %462 = vmatmul.mubr.bf16.gmra.mxu0 %v2087_v21 }
  0x77   : > { %471 = vmatprep.mubr.bf16.mxu0 %v2324_v0 }
  0x7e   : > { %472 = vmatmul.mubr.bf16.gmra.mxu0 %v2088_v22 }
  0x7f   : > { %481 = vmatprep.mubr.bf16.mxu0 %v2324_v0 }
  0x86   : > { %482 = vmatmul.mubr.bf16.gmra.mxu0 %v2089_v23 }
  0x87   : > { %491 = vmatprep.mubr.bf16.mxu0 %v2324_v0 }
  0x8e   : > { %492 = vmatmul.mubr.bf16.gmra.mxu0 %v2090_v24 }
  0x8f   : > { %501 = vmatprep.mubr.bf16.mxu0 %v2324_v0 }
  0x96   : > { %502 = vmatmul.mubr.bf16.gmra.mxu0 %v2091_v25 }
  0x97   : > { %511 = vmatprep.mubr.bf16.mxu0 %v2324_v0 }
  0x9e   : > { %512 = vmatmul.mubr.bf16.gmra.mxu0 %v2092_v26 }
  0x9f   : > { %521 = vmatprep.mubr.bf16.mxu0 %v2324_v0 }
  0xa6   : > { %522 = vmatmul.mubr.bf16.gmra.mxu0 %v2093_v27 }
  0xa7   : > { %531 = vmatprep.mubr.bf16.mxu0 %v2324_v0 }
  0xae   : > { %532 = vmatmul.mubr.bf16.gmra.mxu0 %v2094_v28 }
  0xaf   : > { %541 = vmatprep.mubr.bf16.mxu0 %v2324_v0 }
  0xb6   : > { %542 = vmatmul.mubr.bf16.gmra.mxu0 %v2095_v29 }
  0xb7   : > { %551 = vmatprep.mubr.bf16.mxu0 %v2324_v0 }
  0xbe   : > { %552 = vmatmul.mubr.bf16.gmra.mxu0 %v2096_v30 }
  0xbf   : > { %561 = vmatprep.mubr.bf16.mxu0 %v2324_v0 }
  0xc6   : > { %562 = vmatmul.mubr.bf16.gmra.mxu0 %v2097_v31 }
  0xc7   : > { %571 = vmatprep.mubr.bf16.mxu0 %v2324_v0 }
  0xce   : > { %572 = vmatmul.mubr.bf16.gmra.mxu0 %v2098_v32 }
 0x116   : > { %v423_v33 = vpop.f32.mrf.mxu0 }
 0x118   : > { %v425_v34 = vpop.f32.mrf.mxu0 }
 0x11a   : > { %v427_v35 = vpop.f32.mrf.mxu0 }
 0x11b   : > { %v2532_v36 = vpack.c.bf16 %v427_v35, %v423_v33 }
 0x11c   : > { %v429_v37 = vpop.f32.mrf.mxu0 }
 0x11d   : > { %v2534_v38 = vpack.c.bf16 %v429_v37, %v425_v34  ;;  %622 = vrot.lane.b32.xlu0 %v2532_v36, %s2325_s28 }
 0x11e   : > { %v433_v39 = vpop.f32.mrf.mxu0 }
 0x120   : > { %v435_v40 = vpop.f32.mrf.mxu0 }
 0x122   : > { %v437_v41 = vpop.f32.mrf.mxu0 }
 0x123   : > { %v2538_v42 = vpack.c.bf16 %v437_v41, %v433_v39 }
 0x124   : > { %v439_v43 = vpop.f32.mrf.mxu0 }
 0x125   : > { %v2540_v44 = vpack.c.bf16 %v439_v43, %v435_v40  ;;  %624 = vrot.lane.b32.xlu0 %v2538_v42, %s2325_s28 }
 0x126   : > { %v443_v45 = vpop.f32.mrf.mxu0 }
 0x128   : > { %v2544_v46 = vpop.f32.mrf.mxu0 }
 0x12a   : > { %v447_v47 = vpop.f32.mrf.mxu0 }
 0x12b   : > { %v2546_v48 = vpack.c.bf16 %v447_v47, %v443_v45 }
 0x12c   : > { %v2548_v49 = vpop.f32.mrf.mxu0 }
 0x12d   : > { %626 = vrot.lane.b32.xlu1 %v2546_v48, %s2325_s28  ;;  %v600_v32 = vpack.c.bf16 %v2548_v49, %v2544_v46 }
 0x12e   : > { %v453_v50 = vpop.f32.mrf.mxu0 }
 0x130   : > { %v455_v51 = vpop.f32.mrf.mxu0 }
 0x132   : > { %v457_v52 = vpop.f32.mrf.mxu0 }
 0x133   : > { %v2552_v53 = vpack.c.bf16 %v457_v52, %v453_v50 }
 0x134   : > { %v459_v54 = vpop.f32.mrf.mxu0 }
 0x135   : > { %628 = vrot.lane.b32.xlu1 %v2552_v53, %s2325_s28  ;;  %v601_v26 = vpack.c.bf16 %v459_v54, %v455_v51  ;;  %v673_v50 = vsel %vm3226_vm0, %v2552_v53, 0 }
 0x136   : > { %v463_v55 = vpop.f32.mrf.mxu0 }
 0x138   : > { %v465_v56 = vpop.f32.mrf.mxu0 }
 0x13a   : > { %v467_v57 = vpop.f32.mrf.mxu0 }
 0x13b   : > { %v2556_v58 = vpack.c.bf16 %v467_v57, %v463_v55 }
 0x13c   : > { %v469_v59 = vpop.f32.mrf.mxu0 }
 0x13d   : > { %630 = vrot.lane.b32.xlu0 %v2556_v58, %s2325_s28  ;;  %v602_v23 = vpack.c.bf16 %v469_v59, %v465_v56  ;;  %v676_v40 = vsel %vm3226_vm0, %v2556_v58, 0 }
 0x13e   : > { %v473_v60 = vpop.f32.mrf.mxu0 }
 0x140   : > { %v475_v61 = vpop.f32.mrf.mxu0 }
 0x142   : > { %v477_v62 = vpop.f32.mrf.mxu0 }
 0x143   : > { %v587_v63 = vpack.c.bf16 %v477_v62, %v473_v60  ;;  %v667_v62 = vsel %vm3226_vm0, %v2538_v42, 0 }
 0x144   : > { %v479_v0 = vpop.f32.mrf.mxu0 }
 0x145   : > { %632 = vrot.lane.b32.xlu1 %v587_v63, %s2325_s28  ;;  %v603_v17 = vpack.c.bf16 %v479_v0, %v475_v61  ;;  %v679_v30 = vsel %vm3226_vm0, %v587_v63, 0 }
 0x146   : > { %v483_v1 = vpop.f32.mrf.mxu0 }
 0x148   : > { %v485_v2 = vpop.f32.mrf.mxu0 }
 0x14a   : > { %v487_v3 = vpop.f32.mrf.mxu0 }
 0x14b   : > { %v588_v4 = vpack.c.bf16 %v487_v3, %v483_v1 }
 0x14c   : > { %v489_v5 = vpop.f32.mrf.mxu0 }
 0x14d   : > { %634 = vrot.lane.b32.xlu0 %v588_v4, %s2325_s28  ;;  %v604_v14 = vpack.c.bf16 %v489_v5, %v485_v2  ;;  %v682_v21 = vsel %vm3226_vm0, %v588_v4, 0 }
 0x14e   : > { %v493_v6 = vpop.f32.mrf.mxu0 }
 0x150   : > { %v495_v7 = vpop.f32.mrf.mxu0 }
 0x152   : > { %v497_v8 = vpop.f32.mrf.mxu0 }
 0x153   : > { %v589_v9 = vpack.c.bf16 %v497_v8, %v493_v6 }
 0x154   : > { %v499_v10 = vpop.f32.mrf.mxu0 }
 0x155   : > { %v605_v11 = vpack.c.bf16 %v499_v10, %v495_v7  ;;  %636 = vrot.lane.b32.xlu1 %v589_v9, %s2325_s28  ;;  %1991 = vmatprep.subr.msk.bf16.mxu1 %vm3226_vm0, %v589_v9  ;;  %v685_v12 = vsel %vm3226_vm0, %v589_v9, 0 }
 0x156   : > { %v503_v13 = vpop.f32.mrf.mxu0  ;;  %1864 = vmatpush3.bf16.xpose.msra.mxu1 %v685_v12 }
 0x157   : > { %1992 = vmatprep.subr.msk.bf16.mxu1 %vm3226_vm0, %v588_v4  ;;  %1927 = vmatprep.subr.bf16.mxu0 %v605_v11  ;;  %v664_v4 = vsel %vm3226_vm0, %v2532_v36, 0 }
 0x158   : > { %v505_v15 = vpop.f32.mrf.mxu0  ;;  %1928 = vmatpush3.bf16.msra.mxu0 %v605_v11 }
 0x159   : > { %1929 = vmatprep.subr.bf16.mxu0 %v604_v14 }
 0x15a   : > { %v507_v16 = vpop.f32.mrf.mxu0 }
 0x15b   : > { %v2566_v18 = vpack.c.bf16 %v507_v16, %v503_v13 }
 0x15c   : > { %v509_v19 = vpop.f32.mrf.mxu0  ;;  %1930 = vmatpush3.bf16.msra.mxu0 %v604_v14 }
 0x15d   : > { %v2568_v20 = vpack.c.bf16 %v509_v19, %v505_v15  ;;  %1931 = vmatprep.subr.bf16.mxu0 %v603_v17  ;;  %792 = vrot.lane.b32.xlu0 %v2566_v18, %s2325_s28 }
 0x15e   : > { %v513_v22 = vpop.f32.mrf.mxu0  ;;  %1866 = vmatpush3.bf16.xpose.msra.mxu1 %v682_v21 }
 0x15f   : > { %1993 = vmatprep.subr.msk.bf16.mxu1 %vm3226_vm0, %v587_v63 }
 0x160   : > { %v515_v24 = vpop.f32.mrf.mxu0  ;;  %1932 = vmatpush3.bf16.msra.mxu0 %v603_v17 }
 0x161   : > { %1933 = vmatprep.subr.bf16.mxu0 %v602_v23 }
 0x162   : > { %v517_v25 = vpop.f32.mrf.mxu0 }
 0x163   : > { %v2574_v27 = vpack.c.bf16 %v517_v25, %v513_v22 }
 0x164   : > { %v519_v28 = vpop.f32.mrf.mxu0  ;;  %1934 = vmatpush3.bf16.msra.mxu0 %v602_v23 }
 0x165   : > { %v2576_v29 = vpack.c.bf16 %v519_v28, %v515_v24  ;;  %1935 = vmatprep.subr.bf16.mxu0 %v601_v26  ;;  %794 = vrot.lane.b32.xlu1 %v2574_v27, %s2325_s28  ;;  %v836_v23 = vsel %vm3226_vm0, %v2574_v27, 0  ;;  %v833_v28 = vsel %vm3226_vm0, %v2566_v18, 0 }
 0x166   : > { %v523_v31 = vpop.f32.mrf.mxu0  ;;  %1868 = vmatpush3.bf16.xpose.msra.mxu1 %v679_v30 }
 0x167   : > { %1994 = vmatprep.subr.msk.bf16.mxu1 %vm3226_vm0, %v2556_v58 }
 0x168   : > { %v525_v33 = vpop.f32.mrf.mxu0  ;;  %1936 = vmatpush3.bf16.msra.mxu0 %v601_v26 }
 0x169   : > { %1937 = vmatprep.subr.bf16.mxu0 %v600_v32 }
 0x16a   : > { %v527_v34 = vpop.f32.mrf.mxu0 }
 0x16b   : > { %v2585_v35 = vpack.c.bf16 %v527_v34, %v523_v31 }
 0x16c   : > { %v529_v37 = vpop.f32.mrf.mxu0  ;;  %1938 = vmatpush3.bf16.msra.mxu0 %v600_v32 }
 0x16d   : > { %v2587_v39 = vpack.c.bf16 %v529_v37, %v525_v33  ;;  %1939 = vmatprep.subr.bf16.mxu0 %v2540_v44  ;;  %796 = vrot.lane.b32.xlu0 %v2585_v35, %s2325_s28  ;;  %v839_v21 = vsel %vm3226_vm0, %v2585_v35, 0 }
 0x16e   : > { %v533_v41 = vpop.f32.mrf.mxu0  ;;  %1870 = vmatpush3.bf16.xpose.msra.mxu1 %v676_v40 }
 0x16f   : > { %1995 = vmatprep.subr.msk.bf16.mxu1 %vm3226_vm0, %v2552_v53 }
 0x170   : > { %v535_v43 = vpop.f32.mrf.mxu0  ;;  %1940 = vmatpush3.bf16.msra.mxu0 %v2540_v44 }
 0x171   : > { %1941 = vmatprep.subr.bf16.mxu0 %v2534_v38 }
 0x172   : > { %v537_v45 = vpop.f32.mrf.mxu0 }
 0x173   : > { %v2598_v46 = vpack.c.bf16 %v537_v45, %v533_v41 }
 0x174   : > { %v539_v47 = vpop.f32.mrf.mxu0  ;;  %1942 = vmatpush3.bf16.msra.mxu0 %v2534_v38  ;;  %v670_v38 = vsel %vm3226_vm0, %v2546_v48, 0 }
 0x175   : > { %v2601_v49 = vpack.c.bf16 %v539_v47, %v535_v43  ;;  %798 = vrot.lane.b32.xlu1 %v2598_v46, %s2325_s28  ;;  %v842_v17 = vsel %vm3226_vm0, %v2598_v46, 0 }
 0x176   : > { %v543_v51 = vpop.f32.mrf.mxu0  ;;  %1872 = vmatpush3.bf16.xpose.msra.mxu1 %v673_v50 }
 0x177   : > { %1996 = vmatprep.subr.msk.bf16.mxu1 %vm3226_vm0, %v2546_v48 }
 0x178   : > { %v545_v44 = vpop.f32.mrf.mxu0 }
 0x17a   : > { %v547_v52 = vpop.f32.mrf.mxu0 }
 0x17b   : > { %v594_v54 = vpack.c.bf16 %v547_v52, %v543_v51  ;;  %v953_v52 = vlaneseq }
 0x17c   : > { %v549_v55 = vpop.f32.mrf.mxu0 }
 0x17d   : > { %v2609_v56 = vpack.c.bf16 %v549_v55, %v545_v44  ;;  %800 = vrot.lane.b32.xlu0 %v594_v54, %s2325_s28  ;;  %v845_v15 = vsel %vm3226_vm0, %v594_v54, 0  ;;  %v2711_v55 = vshrl.u32 %v953_v52, 7 }
 0x17e   : > { %v553_v57 = vpop.f32.mrf.mxu0  ;;  %1874 = vmatpush3.bf16.xpose.msra.mxu1 %v670_v38  ;;  %v2713_v38 = vand.u32 127, %v953_v52 }
 0x17f   : > { %1997 = vmatprep.subr.msk.bf16.mxu1 %vm3226_vm0, %v2538_v42 }
 0x180   : > { %v555_v53 = vpop.f32.mrf.mxu0  ;;  %vm972_vm1 = vcmp.le.s32.totalorder %v2713_v38, %v2711_v55 }
 0x182   : > { %v557_v58 = vpop.f32.mrf.mxu0 }
 0x183   : > { %v595_v59 = vpack.c.bf16 %v557_v58, %v553_v57  ;;  %v2721_v58 = vadd.s32 8, %v2711_v55 }
 0x184   : > { %v559_v60 = vpop.f32.mrf.mxu0 }
 0x185   : > { %v2616_v61 = vpack.c.bf16 %v559_v60, %v555_v53  ;;  %802 = vrot.lane.b32.xlu1 %v595_v59, %s2325_s28  ;;  %v848_v13 = vsel %vm3226_vm0, %v595_v59, 0  ;;  %v2718_v53 = vadd.s32 16, %v2711_v55  ;;  %vm973_vm3 = vcmp.le.s32.totalorder %v2713_v38, %v2721_v58 }
 0x186   : > { %v563_v63 = vpop.f32.mrf.mxu0  ;;  %1876 = vmatpush3.bf16.xpose.msra.mxu1 %v667_v62  ;;  %v2734_v62 = vadd.s32 24, %v2711_v55 }
 0x187   : > { %1998 = vmatprep.subr.msk.bf16.mxu1 %vm3226_vm0, %v2532_v36  ;;  %vm974_vm2 = vcmp.le.s32.totalorder %v2713_v38, %v2718_v53 }
 0x188   : > { %v565_v48 = vpop.f32.mrf.mxu0  ;;  %vm975_vm4 = vcmp.le.s32.totalorder %v2713_v38, %v2734_v62 }
 0x18a   : > { %v567_v0 = vpop.f32.mrf.mxu0 }
 0x18b   : > { %v596_v1 = vpack.c.bf16 %v567_v0, %v563_v63 }
 0x18c   : > { %v569_v2 = vpop.f32.mrf.mxu0 }
 0x18d   : > { %v612_v3 = vpack.c.bf16 %v569_v2, %v565_v48  ;;  %804 = vrot.lane.b32.xlu0 %v596_v1, %s2325_s28  ;;  %v851_v11 = vsel %vm3226_vm0, %v596_v1, 0 }
 0x18e   : > { %v573_v5 = vpop.f32.mrf.mxu0  ;;  %1878 = vmatpush3.bf16.xpose.msra.mxu1 %v664_v4  ;;  %v2762_v4 = vadd.s32 48, %v2711_v55 }
 0x18f   : > { %v623_v6 = vpop.permute.xlu0 %622 }
 0x190   : > { %v575_v7 = vpop.f32.mrf.mxu0  ;;  %1879 = vmatprep.mubr.msk.bf16.mxu1 %vm3226_vm0, %v623_v6  ;;  %vm978_vm6 = vcmp.le.s32.totalorder %v2713_v38, %v2762_v4 }
 0x192   : > { %v577_v42 = vpop.f32.mrf.mxu0 }
 0x193   : > { %v597_v8 = vpack.c.bf16 %v577_v42, %v573_v5  ;;  %v2765_v5 = vadd.s32 40, %v2711_v55 }
 0x194   : > { %v579_v24 = vpop.f32.mrf.mxu0 }
 0x195   : > { %806 = vrot.lane.b32.xlu1 %v597_v8, %s2325_s28  ;;  %1999 = vmatprep.subr.msk.bf16.mxu1 %vm3226_vm0, %v597_v8  ;;  %v854_v10 = vsel %vm3226_vm0, %v597_v8, 0  ;;  %v613_v26 = vpack.c.bf16 %v579_v24, %v575_v7  ;;  %vm977_vm7 = vcmp.le.s32.totalorder %v2713_v38, %v2765_v5  ;;  %v2778_v8 = vadd.s32 56, %v2711_v55 }
 0x197   : > { %v625_v9 = vpop.permute.xlu0 %624  ;;  %vm979_vm8 = vcmp.le.s32.totalorder %v2713_v38, %v2778_v8 }
 0x198   : > { %1880 = vmatmul.mubr.msk.bf16.vlgmr.msra.gmra.mxu1 %vm3226_vm0, %v625_v9 }
 0x199   : > { %1896 = vmatpush3.bf16.xpose.msra.mxu1 %v854_v10 }
 0x19a   : > { %2000 = vmatprep.subr.msk.bf16.mxu1 %vm3226_vm0, %v596_v1  ;;  %v2757_v1 = vadd.s32 32, %v2711_v55 }
 0x19c   : > { %vm976_vm5 = vcmp.le.s32.totalorder %v2713_v38, %v2757_v1 }
 0x19f   : > { %v627_v36 = vpop.permute.xlu1 %626 }
 0x1a0   : > { %1883 = vmatprep.mubr.msk.bf16.mxu1 %vm3226_vm0, %v627_v36 }
 0x1a1   : > { %1898 = vmatpush3.bf16.xpose.msra.mxu1 %v851_v11  ;;  %v962_v11 = vadd.s32 64, %v2711_v55 }
 0x1a2   : > { %2001 = vmatprep.subr.msk.bf16.mxu1 %vm3226_vm0, %v595_v59 }
 0x1a3   : > { %vm980_vm9 = vcmp.le.s32.totalorder %v2713_v38, %v962_v11 }
 0x1a7   : > { %v629_v12 = vpop.permute.xlu1 %628 }
 0x1a8   : > { %1884 = vmatmul.mubr.msk.bf16.gmra.mxu1 %vm3226_vm0, %v629_v12 }
 0x1a9   : > { %1900 = vmatpush3.bf16.xpose.msra.mxu1 %v848_v13 }
 0x1aa   : > { %2002 = vmatprep.subr.msk.bf16.mxu1 %vm3226_vm0, %v594_v54 }
 0x1af   : > { %v631_v14 = vpop.permute.xlu0 %630 }
 0x1b0   : > { %1887 = vmatprep.mubr.msk.bf16.mxu1 %vm3226_vm0, %v631_v14  ;;  %v964_v14 = vadd.s32 80, %v2711_v55 }
 0x1b1   : > { %1902 = vmatpush3.bf16.xpose.msra.mxu1 %v845_v15  ;;  %v963_v15 = vadd.s32 72, %v2711_v55 }
 0x1b2   : > { %2003 = vmatprep.subr.msk.bf16.mxu1 %vm3226_vm0, %v2598_v46  ;;  %vm982_vm10 = vcmp.le.s32.totalorder %v2713_v38, %v964_v14 }
 0x1b3   : > { %vm981_vm11 = vcmp.le.s32.totalorder %v2713_v38, %v963_v15 }
 0x1b7   : > { %v633_v16 = vpop.permute.xlu1 %632 }
 0x1b8   : > { %1888 = vmatmul.mubr.msk.bf16.gmra.mxu1 %vm3226_vm0, %v633_v16 }
 0x1b9   : > { %1904 = vmatpush3.bf16.xpose.msra.mxu1 %v842_v17 }
 0x1ba   : > { %2004 = vmatprep.subr.msk.bf16.mxu1 %vm3226_vm0, %v2585_v35 }
 0x1bf   : > { %v635_v19 = vpop.permute.xlu0 %634 }
 0x1c0   : > { %1891 = vmatprep.mubr.msk.bf16.mxu1 %vm3226_vm0, %v635_v19 }
 0x1c1   : > { %1906 = vmatpush3.bf16.xpose.msra.mxu1 %v839_v21  ;;  %v965_v21 = vadd.s32 88, %v2711_v55 }
 0x1c2   : > { %2005 = vmatprep.subr.msk.bf16.mxu1 %vm3226_vm0, %v2574_v27 }
 0x1c3   : > { %vm983_vm12 = vcmp.le.s32.totalorder %v2713_v38, %v965_v21 }
 0x1c7   : > { %v637_v22 = vpop.permute.xlu1 %636 }
 0x1c8   : > { %1892 = vmatmul.mubr.msk.bf16.gmra.mxu1 %vm3226_vm0, %v637_v22 }
 0x1c9   : > { %1908 = vmatpush3.bf16.xpose.msra.mxu1 %v836_v23 }
 0x1ca   : > { %2006 = vmatprep.subr.msk.bf16.mxu1 %vm3226_vm0, %v2566_v18 }
 0x1cf   : > { %v793_v25 = vpop.permute.xlu0 %792 }
 0x1d0   : > { %1911 = vmatprep.mubr.msk.bf16.mxu1 %vm3226_vm0, %v793_v25  ;;  %v966_v25 = vadd.s32 96, %v2711_v55 }
 0x1d1   : > { %1910 = vmatpush3.bf16.xpose.msra.mxu1 %v833_v28 }
 0x1d2   : > { %1959 = vmatprep.subr.bf16.mxu1 %v613_v26  ;;  %vm984_vm13 = vcmp.le.s32.totalorder %v2713_v38, %v966_v25 }
 0x1d7   : > { %v795_v30 = vpop.permute.xlu1 %794 }
 0x1d8   : > { %1912 = vmatmul.mubr.msk.bf16.vlgmr.msra.gmra.mxu1 %vm3226_vm0, %v795_v30  ;;  %v968_v30 = vadd.s32 112, %v2711_v55 }
 0x1d9   : > { %1960 = vmatpush3.bf16.msra.mxu1 %v613_v26 }
 0x1da   : > { %1961 = vmatprep.subr.bf16.mxu1 %v612_v3  ;;  %vm986_vm14 = vcmp.le.s32.totalorder %v2713_v38, %v968_v30 }
 0x1dd   : > { %1962 = vmatpush3.bf16.msra.mxu1 %v612_v3 }
 0x1de   : > { %1963 = vmatprep.subr.bf16.mxu1 %v2616_v61 }
 0x1df   : > { %v797_v27 = vpop.permute.xlu0 %796 }
 0x1e0   : > { %1915 = vmatprep.mubr.msk.bf16.mxu1 %vm3226_vm0, %v797_v27  ;;  %v967_v27 = vadd.s32 104, %v2711_v55 }
 0x1e1   : > { %1964 = vmatpush3.bf16.msra.mxu1 %v2616_v61 }
 0x1e2   : > { %1965 = vmatprep.subr.bf16.mxu1 %v2609_v56  ;;  %vm985_vm15 = vcmp.le.s32.totalorder %v2713_v38, %v967_v27 }
 0x1e5   : > { %1966 = vmatpush3.bf16.msra.mxu1 %v2609_v56 }
 0x1e6   : > { %1967 = vmatprep.subr.bf16.mxu1 %v2601_v49 }
 0x1e7   : > { %v799_v18 = vpop.permute.xlu1 %798 }
 0x1e8   : > { %1916 = vmatmul.mubr.msk.bf16.gmra.mxu1 %vm3226_vm0, %v799_v18 }
 0x1e9   : > { %1968 = vmatpush3.bf16.msra.mxu1 %v2601_v49 }
 0x1ea   : > { %1969 = vmatprep.subr.bf16.mxu1 %v2587_v39 }
 0x1ed   : > { %1970 = vmatpush3.bf16.msra.mxu1 %v2587_v39 }
 0x1ee   : > { %1971 = vmatprep.subr.bf16.mxu1 %v2576_v29 }
 0x1ef   : > { %v801_v31 = vpop.permute.xlu0 %800 }
 0x1f0   : > { %1919 = vmatprep.mubr.msk.bf16.mxu1 %vm3226_vm0, %v801_v31 }
 0x1f1   : > { %1972 = vmatpush3.bf16.msra.mxu1 %v2576_v29 }
 0x1f2   : > { %1973 = vmatprep.subr.bf16.mxu1 %v2568_v20 }
 0x1f5   : > { %1974 = vmatpush3.bf16.msra.mxu1 %v2568_v20 }
 0x1f7   : > { %v803_v32 = vpop.permute.xlu1 %802 }
 0x1f8   : > { %1920 = vmatmul.mubr.msk.bf16.gmra.mxu1 %vm3226_vm0, %v803_v32 }
 0x1ff   : > { %v805_v33 = vpop.permute.xlu0 %804 }
 0x200   : > { %1923 = vmatprep.mubr.msk.bf16.mxu1 %vm3226_vm0, %v805_v33  ;;  %v969_v33 = vadd.s32 120, %v2711_v55 }
 0x207   : > { %v807_v34 = vpop.permute.xlu1 %806 }
 0x208   : > { %1924 = vmatmul.mubr.msk.bf16.gmra.mxu1 %vm3226_vm0, %v807_v34  ;;  %vm987_vm0 = vcmp.le.s32.totalorder %v2713_v38, %v969_v33 }
 0x258   : > { %v2679_v35 = vpop.f32.mrf.mxu1 }
 0x25a   : > { %v2681_v37 = vpop.f32.mrf.mxu1 }
 0x25c   : > { %v2683_v39 = vpop.f32.mrf.mxu1 }
 0x25e   : > { %v2685_v29 = vpop.f32.mrf.mxu1 }
 0x268   : > { %v2687_v40 = vpop.f32.mrf.mxu1 }
 0x26a   : > { %v2689_v20 = vpop.f32.mrf.mxu1 }
 0x26b   : > { %v2881_v55 = vsel %vm976_vm5, %v2689_v20, -inf }
 0x26c   : > { %v2691_v41 = vpop.f32.mrf.mxu1 }
 0x26e   : > { %v2693_v43 = vpop.f32.mrf.mxu1 }
 0x26f   : > { %v2901_v20 = vsel %vm977_vm7, %v2693_v43, -inf }
 0x278   : > { %v2695_v45 = vpop.f32.mrf.mxu1 }
 0x279   : > { %v2921_v43 = vsel %vm982_vm10, %v2695_v45, -inf }
 0x27a   : > { %v2697_v46 = vpop.f32.mrf.mxu1 }
 0x27c   : > { %v2699_v47 = vpop.f32.mrf.mxu1 }
 0x27d   : > { %v2938_v53 = vsel %vm983_vm12, %v2699_v47, -inf }
 0x27e   : > { %v2701_v49 = vpop.f32.mrf.mxu1 }
 0x288   : > { %v2703_v50 = vpop.f32.mrf.mxu1 }
 0x289   : > { %v2945_v45 = vsel %vm986_vm14, %v2703_v50, -inf }
 0x28a   : > { %v2705_v51 = vpop.f32.mrf.mxu1 }
 0x28c   : > { %v2707_v44 = vpop.f32.mrf.mxu1 }
 0x28d   : > { %v2957_v47 = vsel %vm987_vm0, %v2707_v44, -inf }
 0x28e   : > { %v2709_v54 = vpop.f32.mrf.mxu1 }
 0x298   : > { %v1913_v56 = vpop.f32.mrf.mxu1 }
 0x299   : > { %v2739_v63 = vsel %vm974_vm2, %v1913_v56, -inf  ;;  %v2855_v56 = vsel %vm972_vm1, %v2681_v37, -inf  ;;  %v2873_v37 = vsel %vm973_vm3, %v2685_v29, -inf  ;;  %v2895_v29 = vsel %vm978_vm6, %v2687_v40, -inf }
 0x29a   : > { %v890_v57 = vpop.f32.mrf.mxu1  ;;  %v2914_v40 = vsel %vm979_vm8, %v2691_v41, -inf  ;;  %v2933_v41 = vsel %vm984_vm13, %v2705_v51, -inf }
 0x29b   : > { %v2726_v59 = vsel %vm972_vm1, %v890_v57, -inf }
 0x29c   : > { %1084 = vmax.xlane.f32.xlu0 %v2726_v59  ;;  %v1914_v60 = vpop.f32.mrf.mxu1 }
 0x29d   : > { %v2753_v0 = vsel %vm975_vm4, %v1914_v60, -inf  ;;  %v2867_v60 = vsel %vm974_vm2, %v2679_v35, -inf  ;;  %v2887_v35 = vsel %vm975_vm4, %v2683_v39, -inf  ;;  %v2908_v39 = vsel %vm980_vm9, %v2697_v46, -inf }
 0x29e   : > { %v893_v61 = vpop.f32.mrf.mxu1  ;;  %v2926_v46 = vsel %vm981_vm11, %v2701_v49, -inf  ;;  %v2950_v49 = vsel %vm985_vm15, %v2709_v54, -inf }
 0x29f   : > { %v2744_v48 = vsel %vm973_vm3, %v893_v61, -inf }
 0x2a0   : > { %1088 = vmax.xlane.f32.xlu0 %v2739_v63  ;;  %1086 = vmax.xlane.f32.xlu1 %v2744_v48 }
 0x2a4   : > { %1090 = vmax.xlane.f32.xlu0 %v2753_v0 }
 0x2a8   : > { %v1917_v2 = vpop.f32.mrf.mxu1 }
 0x2a9   : > { %v2783_v9 = vsel %vm978_vm6, %v1917_v2, -inf }
 0x2aa   : > { %v906_v3 = vpop.f32.mrf.mxu1 }
 0x2ab   : > { %v2770_v6 = vsel %vm976_vm5, %v906_v3, -inf }
 0x2ac   : > { %1092 = vmax.xlane.f32.xlu1 %v2770_v6  ;;  %v1918_v7 = vpop.f32.mrf.mxu1 }
 0x2ad   : > { %v2797_v36 = vsel %vm979_vm8, %v1918_v7, -inf }
 0x2ae   : > { %v909_v42 = vpop.f32.mrf.mxu1 }
 0x2af   : > { %v2788_v10 = vsel %vm977_vm7, %v909_v42, -inf }
 0x2b0   : > { %1096 = vmax.xlane.f32.xlu1 %v2783_v9  ;;  %1094 = vmax.xlane.f32.xlu0 %v2788_v10 }
 0x2b4   : > { %1098 = vmax.xlane.f32.xlu0 %v2797_v36 }
 0x2b8   : > { %v1921_v12 = vpop.f32.mrf.mxu1 }
 0x2b9   : > { %v2814_v22 = vsel %vm982_vm10, %v1921_v12, -inf }
 0x2ba   : > { %v922_v13 = vpop.f32.mrf.mxu1 }
 0x2bb   : > { %v2806_v16 = vsel %vm980_vm9, %v922_v13, -inf }
 0x2bc   : > { %1100 = vmax.xlane.f32.xlu1 %v2806_v16  ;;  %v1922_v17 = vpop.f32.mrf.mxu1 }
 0x2bd   : > { %v2825_v24 = vsel %vm983_vm12, %v1922_v17, -inf }
 0x2be   : > { %v925_v19 = vpop.f32.mrf.mxu1 }
 0x2bf   : > { %v2818_v23 = vsel %vm981_vm11, %v925_v19, -inf }
 0x2c0   : > { %1104 = vmax.xlane.f32.xlu1 %v2814_v22  ;;  %1102 = vmax.xlane.f32.xlu0 %v2818_v23 }
 0x2c4   : > { %1106 = vmax.xlane.f32.xlu0 %v2825_v24 }
 0x2c8   : > { %v1925_v26 = vpop.f32.mrf.mxu1 }
 0x2c9   : > { %v2842_v34 = vsel %vm986_vm14, %v1925_v26, -inf }
 0x2ca   : > { %v938_v28 = vpop.f32.mrf.mxu1 }
 0x2cb   : > { %v2834_v18 = vsel %vm984_vm13, %v938_v28, -inf }
 0x2cc   : > { %1108 = vmax.xlane.f32.xlu1 %v2834_v18  ;;  %v1926_v31 = vpop.f32.mrf.mxu1 }
 0x2cd   : > { %v2859_v57 = vsel %vm987_vm0, %v1926_v31, -inf  ;;  %vm3233_vm0 = vcmask 523264  }
 0x2ce   : > { %v941_v32 = vpop.f32.mrf.mxu1  ;;  %vm3234_vm1 = vmmov %vm3233_vm0 }
 0x2cf   : > { %v2846_v52 = vsel %vm985_vm15, %v941_v32, -inf  ;;  %vm3235_vm2 = vmmov %vm3233_vm0 }
 0x2d0   : > { %1112 = vmax.xlane.f32.xlu1 %v2842_v34  ;;  %1110 = vmax.xlane.f32.xlu0 %v2846_v52  ;;  %vm3236_vm3 = vmmov %vm3233_vm0 }
 0x2d1   : > { %vm3237_vm4 = vmmov %vm3233_vm0 }
 0x2d2   : > { %vm3238_vm5 = vmmov %vm3233_vm0 }
 0x2d3   : > { %vm3239_vm6 = vmmov %vm3233_vm0 }
 0x2d4   : > { %1052 = vmax.xlane.f32.xlu1 %v2855_v56  ;;  %1114 = vmax.xlane.f32.xlu0 %v2859_v57  ;;  %vm3240_vm7 = vmmov %vm3233_vm0 }
 0x2d5   : > { %vm3241_vm8 = vmmov %vm3233_vm0 }
 0x2d6   : > { %vm3242_vm9 = vmmov %vm3233_vm0 }
 0x2d7   : > { %vm3243_vm10 = vmmov %vm3233_vm0 }
 0x2d8   : > { %1056 = vmax.xlane.f32.xlu1 %v2867_v60  ;;  %1054 = vmax.xlane.f32.xlu0 %v2873_v37  ;;  %vm3244_vm11 = vmmov %vm3233_vm0 }
 0x2d9   : > { %vm3245_vm12 = vmmov %vm3233_vm0 }
 0x2da   : > { %vm3246_vm13 = vmmov %vm3233_vm0 }
 0x2db   : > { %vm3247_vm14 = vmmov %vm3233_vm0 }
 0x2dc   : > { %1060 = vmax.xlane.f32.xlu1 %v2881_v55  ;;  %1058 = vmax.xlane.f32.xlu0 %v2887_v35  ;;  %vm3248_vm15 = vmmov %vm3233_vm0 }
 0x2e0   : > { %1064 = vmax.xlane.f32.xlu1 %v2895_v29  ;;  %1062 = vmax.xlane.f32.xlu0 %v2901_v20 }
 0x2e4   : > { %1068 = vmax.xlane.f32.xlu1 %v2908_v39  ;;  %1066 = vmax.xlane.f32.xlu0 %v2914_v40 }
 0x2e8   : > { %1072 = vmax.xlane.f32.xlu1 %v2921_v43  ;;  %1070 = vmax.xlane.f32.xlu0 %v2926_v46 }
 0x2ec   : > { %1076 = vmax.xlane.f32.xlu1 %v2933_v41  ;;  %1074 = vmax.xlane.f32.xlu0 %v2938_v53 }
 0x2f0   : > { %1080 = vmax.xlane.f32.xlu1 %v2945_v45  ;;  %1078 = vmax.xlane.f32.xlu0 %v2950_v49 }
 0x2f4   : > { %1082 = vmax.xlane.f32.xlu0 %v2957_v47 }
 0x325   : > { %v1085_v51 = vpop.xlane.xlu0 %1084 }
 0x326   : > { %v1132_v50 = vsub.f32 %v2726_v59, %v1085_v51 }
 0x328   : > { %v1180_v58 = vmul.f32 1.442695, %v1132_v50 }
 0x329   : > { %v1089_v61 = vpop.xlane.xlu0 %1088  ;;  %v1087_v62 = vpop.xlane.xlu1 %1086 }
 0x32a   : > { %2099 = vpow2.f32 %v1180_v58  ;;  %v1134_v54 = vsub.f32 %v2739_v63, %v1089_v61  ;;  %v1133_v1 = vsub.f32 %v2744_v48, %v1087_v62 }
 0x32c   : > { %v1184_v2 = vmul.f32 1.442695, %v1134_v54  ;;  %v1182_v3 = vmul.f32 1.442695, %v1133_v1 }
 0x32d   : > { %v1091_v4 = vpop.xlane.xlu0 %1090 }
 0x32e   : > { %2101 = vpow2.f32 %v1184_v2  ;;  %v1135_v44 = vsub.f32 %v2753_v0, %v1091_v4 }
 0x32f   : > { %2103 = vpow2.f32 %v1182_v3 }
 0x330   : > { %v1186_v38 = vmul.f32 1.442695, %v1135_v44 }
 0x332   : > { %2105 = vpow2.f32 %v1186_v38 }
 0x335   : > { %v1093_v5 = vpop.xlane.xlu1 %1092 }
 0x336   : > { %v1136_v59 = vsub.f32 %v2770_v6, %v1093_v5 }
 0x337   : > { %v2965_v7 = vpop.eup %2099 }
 0x338   : > { %v1188_v42 = vmul.f32 1.442695, %v1136_v59  ;;  %1244 = vadd.xlane.f32.xlu1 %v2965_v7 }
 0x339   : > { %v1097_v63 = vpop.xlane.xlu1 %1096  ;;  %v1095_v8 = vpop.xlane.xlu0 %1094 }
 0x33a   : > { %2107 = vpow2.f32 %v1188_v42  ;;  %v1138_v48 = vsub.f32 %v2783_v9, %v1097_v63  ;;  %v1137_v11 = vsub.f32 %v2788_v10, %v1095_v8 }
 0x33b   : > { %v2970_v12 = vpop.eup %2101 }
 0x33c   : > { %v2972_v0 = vpop.eup %2103  ;;  %v1192_v13 = vmul.f32 1.442695, %v1138_v48  ;;  %v1190_v14 = vmul.f32 1.442695, %v1137_v11  ;;  %1248 = vadd.xlane.f32.xlu1 %v2970_v12 }
 0x33d   : > { %1246 = vadd.xlane.f32.xlu0 %v2972_v0  ;;  %v1099_v6 = vpop.xlane.xlu0 %1098 }
 0x33e   : > { %2109 = vpow2.f32 %v1192_v13  ;;  %v1139_v15 = vsub.f32 %v2797_v36, %v1099_v6 }
 0x33f   : > { %v2977_v17 = vpop.eup %2105  ;;  %2111 = vpow2.f32 %v1190_v14 }
 0x340   : > { %v1194_v9 = vmul.f32 1.442695, %v1139_v15 }
 0x341   : > { %1250 = vadd.xlane.f32.xlu0 %v2977_v17 }
 0x342   : > { %2113 = vpow2.f32 %v1194_v9 }
 0x345   : > { %v1101_v10 = vpop.xlane.xlu1 %1100 }
 0x346   : > { %v1140_v19 = vsub.f32 %v2806_v16, %v1101_v10 }
 0x347   : > { %v2981_v21 = vpop.eup %2107 }
 0x348   : > { %v1196_v25 = vmul.f32 1.442695, %v1140_v19  ;;  %1252 = vadd.xlane.f32.xlu1 %v2981_v21 }
 0x349   : > { %v1105_v26 = vpop.xlane.xlu1 %1104  ;;  %v1103_v28 = vpop.xlane.xlu0 %1102 }
 0x34a   : > { %2115 = vpow2.f32 %v1196_v25  ;;  %v1142_v36 = vsub.f32 %v2814_v22, %v1105_v26  ;;  %v1141_v30 = vsub.f32 %v2818_v23, %v1103_v28 }
 0x34b   : > { %v2986_v27 = vpop.eup %2109 }
 0x34c   : > { %v2988_v31 = vpop.eup %2111  ;;  %v1200_v32 = vmul.f32 1.442695, %v1142_v36  ;;  %v1198_v33 = vmul.f32 1.442695, %v1141_v30  ;;  %1256 = vadd.xlane.f32.xlu1 %v2986_v27 }
 0x34d   : > { %1254 = vadd.xlane.f32.xlu0 %v2988_v31  ;;  %v1107_v16 = vpop.xlane.xlu0 %1106 }
 0x34e   : > { %2117 = vpow2.f32 %v1200_v32  ;;  %v1143_v51 = vsub.f32 %v2825_v24, %v1107_v16 }
 0x34f   : > { %v2993_v50 = vpop.eup %2113  ;;  %2119 = vpow2.f32 %v1198_v33 }
 0x350   : > { %v1202_v22 = vmul.f32 1.442695, %v1143_v51 }
 0x351   : > { %1258 = vadd.xlane.f32.xlu0 %v2993_v50 }
 0x352   : > { %2121 = vpow2.f32 %v1202_v22 }
 0x355   : > { %v1109_v23 = vpop.xlane.xlu1 %1108 }
 0x356   : > { %v1144_v58 = vsub.f32 %v2834_v18, %v1109_v23 }
 0x357   : > { %v2997_v61 = vpop.eup %2115 }
 0x358   : > { %v1204_v62 = vmul.f32 1.442695, %v1144_v58  ;;  %1260 = vadd.xlane.f32.xlu1 %v2997_v61 }
 0x359   : > { %v1113_v54 = vpop.xlane.xlu1 %1112  ;;  %v1111_v1 = vpop.xlane.xlu0 %1110 }
 0x35a   : > { %2123 = vpow2.f32 %v1204_v62  ;;  %v1146_v24 = vsub.f32 %v2842_v34, %v1113_v54  ;;  %v1145_v2 = vsub.f32 %v2846_v52, %v1111_v1 }
 0x35b   : > { %v3002_v3 = vpop.eup %2117 }
 0x35c   : > { %v3004_v4 = vpop.eup %2119  ;;  %v1208_v44 = vmul.f32 1.442695, %v1146_v24  ;;  %v1206_v38 = vmul.f32 1.442695, %v1145_v2  ;;  %1264 = vadd.xlane.f32.xlu1 %v3002_v3 }
 0x35d   : > { %1262 = vadd.xlane.f32.xlu0 %v3004_v4  ;;  %v1053_v18 = vpop.xlane.xlu1 %1052  ;;  %v1115_v5 = vpop.xlane.xlu0 %1114 }
 0x35e   : > { %2125 = vpow2.f32 %v1208_v44  ;;  %v1116_v59 = vsub.f32 %v2855_v56, %v1053_v18  ;;  %v1147_v42 = vsub.f32 %v2859_v57, %v1115_v5 }
 0x35f   : > { %v3010_v34 = vpop.eup %2121  ;;  %2127 = vpow2.f32 %v1206_v38 }
 0x360   : > { %v1148_v52 = vmul.f32 1.442695, %v1116_v59  ;;  %v1210_v63 = vmul.f32 1.442695, %v1147_v42 }
 0x361   : > { %1266 = vadd.xlane.f32.xlu0 %v3010_v34  ;;  %v1057_v8 = vpop.xlane.xlu1 %1056  ;;  %v1055_v48 = vpop.xlane.xlu0 %1054 }
 0x362   : > { %2129 = vpow2.f32 %v1148_v52  ;;  %v1118_v11 = vsub.f32 %v2867_v60, %v1057_v8  ;;  %v1117_v13 = vsub.f32 %v2873_v37, %v1055_v48 }
 0x363   : > { %2131 = vpow2.f32 %v1210_v63 }
 0x364   : > { %v1152_v14 = vmul.f32 1.442695, %v1118_v11  ;;  %v1150_v6 = vmul.f32 1.442695, %v1117_v13 }
 0x365   : > { %v1061_v56 = vpop.xlane.xlu1 %1060  ;;  %v1059_v15 = vpop.xlane.xlu0 %1058 }
 0x366   : > { %2133 = vpow2.f32 %v1152_v14  ;;  %v1120_v57 = vsub.f32 %v2881_v55, %v1061_v56  ;;  %v1119_v9 = vsub.f32 %v2887_v35, %v1059_v15 }
 0x367   : > { %v3017_v10 = vpop.eup %2123  ;;  %2135 = vpow2.f32 %v1150_v6 }
 0x368   : > { %v1156_v19 = vmul.f32 1.442695, %v1120_v57  ;;  %v1154_v25 = vmul.f32 1.442695, %v1119_v9  ;;  %1268 = vadd.xlane.f32.xlu1 %v3017_v10 }
 0x369   : > { %v1065_v60 = vpop.xlane.xlu1 %1064  ;;  %v1063_v26 = vpop.xlane.xlu0 %1062 }
 0x36a   : > { %2137 = vpow2.f32 %v1156_v19  ;;  %v1122_v37 = vsub.f32 %v2895_v29, %v1065_v60  ;;  %v1121_v28 = vsub.f32 %v2901_v20, %v1063_v26 }
 0x36b   : > { %v3022_v36 = vpop.eup %2125  ;;  %2139 = vpow2.f32 %v1154_v25 }
 0x36c   : > { %v3024_v55 = vpop.eup %2127  ;;  %v1160_v35 = vmul.f32 1.442695, %v1122_v37  ;;  %v1158_v30 = vmul.f32 1.442695, %v1121_v28  ;;  %1272 = vadd.xlane.f32.xlu1 %v3022_v36 }
 0x36d   : > { %1270 = vadd.xlane.f32.xlu0 %v3024_v55  ;;  %v1069_v32 = vpop.xlane.xlu1 %1068  ;;  %v1067_v33 = vpop.xlane.xlu0 %1066 }
 0x36e   : > { %2141 = vpow2.f32 %v1160_v35  ;;  %v1124_v16 = vsub.f32 %v2908_v39, %v1069_v32  ;;  %v1123_v29 = vsub.f32 %v2914_v40, %v1067_v33 }
 0x36f   : > { %v3030_v51 = vpop.eup %2129  ;;  %2143 = vpow2.f32 %v1158_v30 }
 0x370   : > { %v3032_v20 = vpop.eup %2131  ;;  %v1164_v22 = vmul.f32 1.442695, %v1124_v16  ;;  %v1162_v23 = vmul.f32 1.442695, %v1123_v29  ;;  %1212 = vadd.xlane.f32.xlu1 %v3030_v51 }
 0x371   : > { %1274 = vadd.xlane.f32.xlu0 %v3032_v20  ;;  %v1073_v58 = vpop.xlane.xlu1 %1072  ;;  %v1071_v62 = vpop.xlane.xlu0 %1070 }
 0x372   : > { %2145 = vpow2.f32 %v1164_v22  ;;  %v1126_v54 = vsub.f32 %v2921_v43, %v1073_v58  ;;  %v1125_v39 = vsub.f32 %v2926_v46, %v1071_v62 }
 0x373   : > { %v3038_v1 = vpop.eup %2133  ;;  %2147 = vpow2.f32 %v1162_v23 }
 0x374   : > { %v3040_v40 = vpop.eup %2135  ;;  %v1168_v24 = vmul.f32 1.442695, %v1126_v54  ;;  %v1166_v2 = vmul.f32 1.442695, %v1125_v39  ;;  %1216 = vadd.xlane.f32.xlu1 %v3038_v1 }
 0x375   : > { %1214 = vadd.xlane.f32.xlu0 %v3040_v40  ;;  %v1077_v44 = vpop.xlane.xlu1 %1076  ;;  %v1075_v38 = vpop.xlane.xlu0 %1074 }
 0x376   : > { %2149 = vpow2.f32 %v1168_v24  ;;  %v1128_v18 = vsub.f32 %v2933_v41, %v1077_v44  ;;  %v1127_v43 = vsub.f32 %v2938_v53, %v1075_v38 }
 0x377   : > { %v3046_v5 = vpop.eup %2137  ;;  %2151 = vpow2.f32 %v1166_v2 }
 0x378   : > { %v3048_v46 = vpop.eup %2139  ;;  %v1172_v59 = vmul.f32 1.442695, %v1128_v18  ;;  %v1170_v42 = vmul.f32 1.442695, %v1127_v43  ;;  %1220 = vadd.xlane.f32.xlu1 %v3046_v5 }
 0x379   : > { %1218 = vadd.xlane.f32.xlu0 %v3048_v46  ;;  %v1081_v52 = vpop.xlane.xlu1 %1080  ;;  %v1079_v63 = vpop.xlane.xlu0 %1078 }
 0x37a   : > { %2153 = vpow2.f32 %v1172_v59  ;;  %v1130_v8 = vsub.f32 %v2945_v45, %v1081_v52  ;;  %v1129_v41 = vsub.f32 %v2950_v49, %v1079_v63 }
 0x37b   : > { %v3054_v48 = vpop.eup %2141  ;;  %2155 = vpow2.f32 %v1170_v42 }
 0x37c   : > { %v3056_v53 = vpop.eup %2143  ;;  %v1176_v11 = vmul.f32 1.442695, %v1130_v8  ;;  %v1174_v13 = vmul.f32 1.442695, %v1129_v41  ;;  %1224 = vadd.xlane.f32.xlu1 %v3054_v48 }
 0x37d   : > { %1222 = vadd.xlane.f32.xlu0 %v3056_v53  ;;  %v1083_v14 = vpop.xlane.xlu0 %1082 }
 0x37e   : > { %2157 = vpow2.f32 %v1176_v11  ;;  %v1131_v6 = vsub.f32 %v2957_v47, %v1083_v14 }
 0x37f   : > { %v3061_v56 = vpop.eup %2145  ;;  %2159 = vpow2.f32 %v1174_v13 }
 0x380   : > { %v3063_v45 = vpop.eup %2147  ;;  %v1178_v49 = vmul.f32 1.442695, %v1131_v6  ;;  %1228 = vadd.xlane.f32.xlu1 %v3061_v56 }
 0x381   : > { %1226 = vadd.xlane.f32.xlu0 %v3063_v45 }
 0x382   : > { %2161 = vpow2.f32 %v1178_v49 }
 0x383   : > { %v3067_v15 = vpop.eup %2149 }
 0x384   : > { %v3069_v57 = vpop.eup %2151  ;;  %1232 = vadd.xlane.f32.xlu1 %v3067_v15 }
 0x385   : > { %1230 = vadd.xlane.f32.xlu0 %v3069_v57 }
 0x387   : > { %v3073_v47 = vpop.eup %2153 }
 0x388   : > { %v3075_v9 = vpop.eup %2155  ;;  %1236 = vadd.xlane.f32.xlu1 %v3073_v47 }
 0x389   : > { %1234 = vadd.xlane.f32.xlu0 %v3075_v9 }
 0x38b   : > { %v3079_v19 = vpop.eup %2157 }
 0x38c   : > { %v3081_v25 = vpop.eup %2159  ;;  %1240 = vadd.xlane.f32.xlu1 %v3079_v19 }
 0x38d   : > { %1238 = vadd.xlane.f32.xlu0 %v3081_v25 }
 0x38f   : > { %v3085_v60 = vpop.eup %2161 }
 0x391   : > { %1242 = vadd.xlane.f32.xlu0 %v3085_v60 }
 0x3c1   : > { %v1245_v26 = vpop.xlane.xlu1 %1244 }
 0x3c2   : > { %2163 = vrcp.f32 %v1245_v26 }
 0x3c5   : > { %v1249_v37 = vpop.xlane.xlu1 %1248 }
 0x3c6   : > { %v1247_v28 = vpop.xlane.xlu0 %1246 }
 0x3c7   : > { %2165 = vrcp.f32 %v1247_v28 }
 0x3c8   : > { %2167 = vrcp.f32 %v1249_v37 }
 0x3ca   : > { %v1251_v35 = vpop.xlane.xlu0 %1250 }
 0x3cb   : > { %2169 = vrcp.f32 %v1251_v35 }
 0x3cf   : > { %v2164_v32 = vpop.eup %2163 }
 0x3d0   : > { %v1324_v16 = vmul.f32 %v2164_v32, %v2965_v7 }
 0x3d1   : > { %v1253_v30 = vpop.xlane.xlu1 %1252 }
 0x3d2   : > { %2171 = vrcp.f32 %v1253_v30 }
 0x3d4   : > { %v2166_v33 = vpop.eup %2165 }
 0x3d5   : > { %v1325_v29 = vmul.f32 %v2166_v33, %v2972_v0  ;;  %v2168_v22 = vpop.eup %2167  ;;  %v1257_v23 = vpop.xlane.xlu1 %1256 }
 0x3d6   : > { %v1255_v58 = vpop.xlane.xlu0 %1254  ;;  %v1326_v39 = vmul.f32 %v2168_v22, %v2970_v12 }
 0x3d7   : > { %2173 = vrcp.f32 %v1255_v58  ;;  %v1348_v62 = vpack.c.bf16 %v1325_v29, %v1324_v16 }
 0x3d8   : > { %v2170_v54 = vpop.eup %2169  ;;  %2175 = vrcp.f32 %v1257_v23 }
 0x3d9   : > { %1975 = vmatprep.mubr.bf16.mxu1 %v1348_v62  ;;  %v1327_v24 = vmul.f32 %v2170_v54, %v2977_v17 }
 0x3da   : > { %v1259_v2 = vpop.xlane.xlu0 %1258 }
 0x3db   : > { %2177 = vrcp.f32 %v1259_v2  ;;  %v1349_v44 = vpack.c.bf16 %v1327_v24, %v1326_v39 }
 0x3dd   : > { %1976 = vmatmul.mubr.bf16.vlgmr.msra.gmra.mxu1 %v1349_v44 }
 0x3df   : > { %v2172_v7 = vpop.eup %2171 }
 0x3e0   : > { %v1328_v0 = vmul.f32 %v2172_v7, %v2981_v21 }
 0x3e1   : > { %v1261_v38 = vpop.xlane.xlu1 %1260 }
 0x3e2   : > { %2179 = vrcp.f32 %v1261_v38 }
 0x3e4   : > { %v2174_v18 = vpop.eup %2173 }
 0x3e5   : > { %v1329_v43 = vmul.f32 %v2174_v18, %v2988_v31  ;;  %v2176_v59 = vpop.eup %2175  ;;  %v1265_v42 = vpop.xlane.xlu1 %1264 }
 0x3e6   : > { %v1263_v52 = vpop.xlane.xlu0 %1262  ;;  %v1330_v17 = vmul.f32 %v2176_v59, %v2986_v27 }
 0x3e7   : > { %2181 = vrcp.f32 %v1263_v52  ;;  %v1350_v63 = vpack.c.bf16 %v1329_v43, %v1328_v0 }
 0x3e8   : > { %v2178_v12 = vpop.eup %2177  ;;  %2183 = vrcp.f32 %v1265_v42 }
 0x3e9   : > { %1979 = vmatprep.mubr.bf16.mxu1 %v1350_v63  ;;  %v1331_v8 = vmul.f32 %v2178_v12, %v2993_v50 }
 0x3ea   : > { %v1267_v41 = vpop.xlane.xlu0 %1266 }
 0x3eb   : > { %2185 = vrcp.f32 %v1267_v41  ;;  %v1351_v11 = vpack.c.bf16 %v1331_v8, %v1330_v17 }
 0x3ed   : > { %1980 = vmatmul.mubr.bf16.gmra.mxu1 %v1351_v11 }
 0x3ef   : > { %v2180_v21 = vpop.eup %2179 }
 0x3f0   : > { %v1332_v6 = vmul.f32 %v2180_v21, %v2997_v61 }
 0x3f1   : > { %v1269_v13 = vpop.xlane.xlu1 %1268 }
 0x3f2   : > { %2187 = vrcp.f32 %v1269_v13 }
 0x3f4   : > { %v2182_v14 = vpop.eup %2181 }
 0x3f5   : > { %v1273_v31 = vpop.xlane.xlu1 %1272  ;;  %v1333_v49 = vmul.f32 %v2182_v14, %v3004_v4  ;;  %v2184_v26 = vpop.eup %2183 }
 0x3f6   : > { %v1271_v37 = vpop.xlane.xlu0 %1270  ;;  %v1334_v35 = vmul.f32 %v2184_v26, %v3002_v3 }
 0x3f7   : > { %2189 = vrcp.f32 %v1271_v37  ;;  %v1352_v28 = vpack.c.bf16 %v1333_v49, %v1332_v6 }
 0x3f8   : > { %v2186_v27 = vpop.eup %2185  ;;  %2191 = vrcp.f32 %v1273_v31 }
 0x3f9   : > { %1983 = vmatprep.mubr.bf16.mxu1 %v1352_v28  ;;  %v1213_v50 = vpop.xlane.xlu1 %1212  ;;  %v1335_v30 = vmul.f32 %v2186_v27, %v3010_v34 }
 0x3fa   : > { %v1275_v32 = vpop.xlane.xlu0 %1274 }
 0x3fb   : > { %2193 = vrcp.f32 %v1275_v32  ;;  %v1353_v33 = vpack.c.bf16 %v1335_v30, %v1334_v35 }
 0x3fc   : > { %2195 = vrcp.f32 %v1213_v50 }
 0x3fd   : > { %1984 = vmatmul.mubr.bf16.gmra.mxu1 %v1353_v33  ;;  %v1217_v61 = vpop.xlane.xlu1 %1216 }
 0x3fe   : > { %v1215_v16 = vpop.xlane.xlu0 %1214 }
 0x3ff   : > { %2197 = vrcp.f32 %v1215_v16  ;;  %v2188_v29 = vpop.eup %2187 }
 0x400   : > { %2199 = vrcp.f32 %v1217_v61  ;;  %v1336_v3 = vmul.f32 %v2188_v29, %v3017_v10 }
 0x401   : > { %v1221_v4 = vpop.xlane.xlu1 %1220 }
 0x402   : > { %v1219_v22 = vpop.xlane.xlu0 %1218 }
 0x403   : > { %2201 = vrcp.f32 %v1219_v22 }
 0x404   : > { %v2190_v23 = vpop.eup %2189  ;;  %2203 = vrcp.f32 %v1221_v4 }
 0x405   : > { %v1225_v58 = vpop.xlane.xlu1 %1224  ;;  %v1337_v34 = vmul.f32 %v2190_v23, %v3024_v55  ;;  %v2192_v62 = vpop.eup %2191 }
 0x406   : > { %v1223_v54 = vpop.xlane.xlu0 %1222  ;;  %v1338_v44 = vmul.f32 %v2192_v62, %v3022_v36 }
 0x407   : > { %2205 = vrcp.f32 %v1223_v54  ;;  %v1354_v39 = vpack.c.bf16 %v1337_v34, %v1336_v3 }
 0x408   : > { %v2194_v24 = vpop.eup %2193  ;;  %2207 = vrcp.f32 %v1225_v58 }
 0x409   : > { %1987 = vmatprep.mubr.bf16.mxu1 %v1354_v39  ;;  %v1229_v2 = vpop.xlane.xlu1 %1228  ;;  %v1339_v38 = vmul.f32 %v2194_v24, %v3032_v20  ;;  %v2196_v7 = vpop.eup %2195 }
 0x40a   : > { %v1227_v18 = vpop.xlane.xlu0 %1226  ;;  %v1308_v55 = vmul.f32 %v2196_v7, %v3030_v51 }
 0x40b   : > { %2209 = vrcp.f32 %v1227_v18  ;;  %v1355_v0 = vpack.c.bf16 %v1339_v38, %v1338_v44 }
 0x40c   : > { %v2198_v43 = vpop.eup %2197  ;;  %2211 = vrcp.f32 %v1229_v2 }
 0x40d   : > { %1988 = vmatmul.mubr.bf16.gmra.mxu1 %v1355_v0  ;;  %v1233_v10 = vpop.xlane.xlu1 %1232  ;;  %v1309_v59 = vmul.f32 %v2198_v43, %v3040_v40  ;;  %v2200_v42 = vpop.eup %2199 }
 0x40e   : > { %v1231_v52 = vpop.xlane.xlu0 %1230  ;;  %v1310_v20 = vmul.f32 %v2200_v42, %v3038_v1 }
 0x40f   : > { %2213 = vrcp.f32 %v1231_v52  ;;  %v1340_v63 = vpack.c.bf16 %v1309_v59, %v1308_v55 }
 0x410   : > { %v2202_v12 = vpop.eup %2201  ;;  %2215 = vrcp.f32 %v1233_v10 }
 0x411   : > { %1943 = vmatprep.mubr.bf16.mxu0 %v1340_v63  ;;  %v1237_v36 = vpop.xlane.xlu1 %1236  ;;  %v1311_v17 = vmul.f32 %v2202_v12, %v3048_v46  ;;  %v2204_v8 = vpop.eup %2203 }
 0x412   : > { %v1235_v41 = vpop.xlane.xlu0 %1234  ;;  %v1312_v51 = vmul.f32 %v2204_v8, %v3046_v5 }
 0x413   : > { %2217 = vrcp.f32 %v1235_v41  ;;  %v1341_v11 = vpack.c.bf16 %v1311_v17, %v1310_v20 }
 0x414   : > { %v2206_v13 = vpop.eup %2205  ;;  %2219 = vrcp.f32 %v1237_v36 }
 0x415   : > { %1944 = vmatmul.mubr.bf16.vlgmr.msra.gmra.mxu0 %v1341_v11  ;;  %v1313_v40 = vmul.f32 %v2206_v13, %v3056_v53  ;;  %v2208_v21 = vpop.eup %2207  ;;  %v1241_v14 = vpop.xlane.xlu1 %1240 }
 0x416   : > { %v1239_v31 = vpop.xlane.xlu0 %1238  ;;  %v1314_v1 = vmul.f32 %v2208_v21, %v3054_v48 }
 0x417   : > { %2221 = vrcp.f32 %v1239_v31  ;;  %v1342_v6 = vpack.c.bf16 %v1313_v40, %v1312_v51 }
 0x418   : > { %v2210_v49 = vpop.eup %2209  ;;  %2223 = vrcp.f32 %v1241_v14 }
 0x419   : > { %1947 = vmatprep.mubr.bf16.mxu0 %v1342_v6  ;;  %v1315_v46 = vmul.f32 %v2210_v49, %v3063_v45  ;;  %v2212_v26 = vpop.eup %2211 }
 0x41a   : > { %v1243_v37 = vpop.xlane.xlu0 %1242  ;;  %v1316_v5 = vmul.f32 %v2212_v26, %v3061_v56 }
 0x41b   : > { %2225 = vrcp.f32 %v1243_v37  ;;  %v1343_v28 = vpack.c.bf16 %v1315_v46, %v1314_v1 }
 0x41c   : > { %v2214_v27 = vpop.eup %2213 }
 0x41d   : > { %1948 = vmatmul.mubr.bf16.gmra.mxu0 %v1343_v28  ;;  %v1317_v53 = vmul.f32 %v2214_v27, %v3069_v57  ;;  %v2216_v50 = vpop.eup %2215 }
 0x41e   : > { %v1318_v32 = vmul.f32 %v2216_v50, %v3067_v15 }
 0x41f   : > { %v1344_v35 = vpack.c.bf16 %v1317_v53, %v1316_v5 }
 0x420   : > { %v2218_v30 = vpop.eup %2217 }
 0x421   : > { %1951 = vmatprep.mubr.bf16.mxu0 %v1344_v35  ;;  %v1319_v48 = vmul.f32 %v2218_v30, %v3075_v9  ;;  %v2220_v33 = vpop.eup %2219 }
 0x422   : > { %v1320_v16 = vmul.f32 %v2220_v33, %v3073_v47 }
 0x423   : > { %v1345_v45 = vpack.c.bf16 %v1319_v48, %v1318_v32 }
 0x424   : > { %v2222_v61 = vpop.eup %2221 }
 0x425   : > { %1952 = vmatmul.mubr.bf16.gmra.mxu0 %v1345_v45  ;;  %v1321_v4 = vmul.f32 %v2222_v61, %v3081_v25  ;;  %v2224_v29 = vpop.eup %2223 }
 0x426   : > { %v1322_v57 = vmul.f32 %v2224_v29, %v3079_v19 }
 0x427   : > { %v1346_v56 = vpack.c.bf16 %v1321_v4, %v1320_v16 }
 0x428   : > { %v2226_v22 = vpop.eup %2225 }
 0x429   : > { %1955 = vmatprep.mubr.bf16.mxu0 %v1346_v56  ;;  %v1323_v23 = vmul.f32 %v2226_v22, %v3085_v60 }
 0x42b   : > { %v1347_v58 = vpack.c.bf16 %v1323_v23, %v1322_v57 }
 0x42d   : > { %1956 = vmatmul.mubr.bf16.gmra.mxu0 %v1347_v58 }
 0x49d   : > { %v1977_v15 = vpop.f32.mrf.mxu1 }
 0x49e   : > { %1570 = vrot.lane.b32.xlu1 %v1977_v15, %s2325_s28 }
 0x49f   : > { %v1487_v9 = vpop.f32.mrf.mxu1 }
 0x4a1   : > { %v1978_v3 = vpop.f32.mrf.mxu1 }
 0x4a2   : > { %1566 = vrot.lane.b32.xlu1 %v1487_v9, %s2325_s28 }
 0x4a3   : > { %v1490_v47 = vpop.f32.mrf.mxu1 }
 0x4a4   : > { %1568 = vrot.lane.b32.xlu0 %v1490_v47, %s2325_s28 }
 0x4a6   : > { %1572 = vrot.lane.b32.xlu1 %v1978_v3, %s2325_s28 }
 0x4ad   : > { %v1981_v25 = vpop.f32.mrf.mxu1 }
 0x4ae   : > { %1578 = vrot.lane.b32.xlu0 %v1981_v25, %s2325_s28 }
 0x4af   : > { %v1503_v19 = vpop.f32.mrf.mxu1 }
 0x4b1   : > { %v1982_v34 = vpop.f32.mrf.mxu1 }
 0x4b2   : > { %1574 = vrot.lane.b32.xlu0 %v1503_v19, %s2325_s28  ;;  %1580 = vrot.lane.b32.xlu1 %v1982_v34, %s2325_s28 }
 0x4b3   : > { %v1506_v60 = vpop.f32.mrf.mxu1 }
 0x4b6   : > { %1576 = vrot.lane.b32.xlu1 %v1506_v60, %s2325_s28 }
 0x4bd   : > { %v1985_v62 = vpop.f32.mrf.mxu1 }
 0x4be   : > { %1586 = vrot.lane.b32.xlu0 %v1985_v62, %s2325_s28 }
 0x4bf   : > { %v1519_v54 = vpop.f32.mrf.mxu1 }
 0x4c1   : > { %v1986_v39 = vpop.f32.mrf.mxu1 }
 0x4c2   : > { %1582 = vrot.lane.b32.xlu0 %v1519_v54, %s2325_s28  ;;  %1588 = vrot.lane.b32.xlu1 %v1986_v39, %s2325_s28 }
 0x4c3   : > { %v1522_v24 = vpop.f32.mrf.mxu1 }
 0x4c6   : > { %1584 = vrot.lane.b32.xlu1 %v1522_v24, %s2325_s28 }
 0x4cd   : > { %v1989_v2 = vpop.f32.mrf.mxu1 }
 0x4cf   : > { %v1535_v44 = vpop.f32.mrf.mxu1 }
 0x4d0   : > { %1590 = vrot.lane.b32.xlu0 %v1535_v44, %s2325_s28 }
 0x4d1   : > { %v1990_v38 = vpop.f32.mrf.mxu1 }
 0x4d3   : > { %v1538_v7 = vpop.f32.mrf.mxu1 }
 0x4d4   : > { %1594 = vrot.lane.b32.xlu0 %v1989_v2, %s2325_s28  ;;  %1592 = vrot.lane.b32.xlu1 %v1538_v7, %s2325_s28 }
 0x4d5   : > { %v1945_v18 = vpop.f32.mrf.mxu0 }
 0x4d7   : > { %v1390_v0 = vpop.f32.mrf.mxu0 }
 0x4d8   : > { %1596 = vrot.lane.b32.xlu1 %v1990_v38, %s2325_s28 }
 0x4d9   : > { %v1946_v10 = vpop.f32.mrf.mxu0 }
 0x4db   : > { %v1393_v42 = vpop.f32.mrf.mxu0 }
 0x4dd   : > { %v1949_v20 = vpop.f32.mrf.mxu0 }
 0x4df   : > { %v1406_v8 = vpop.f32.mrf.mxu0 }
 0x4e1   : > { %v1950_v11 = vpop.f32.mrf.mxu0 }
 0x4e3   : > { %v1409_v21 = vpop.f32.mrf.mxu0 }
 0x4e5   : > { %v1953_v49 = vpop.f32.mrf.mxu0 }
 0x4e7   : > { %v1422_v46 = vpop.f32.mrf.mxu0 }
 0x4e9   : > { %v1954_v37 = vpop.f32.mrf.mxu0 }
 0x4eb   : > { %v1425_v53 = vpop.f32.mrf.mxu0 }
 0x4ed   : > { %v1957_v32 = vpop.f32.mrf.mxu0 }
 0x4ef   : > { %v1438_v33 = vpop.f32.mrf.mxu0 }
 0x4f1   : > { %v1958_v45 = vpop.f32.mrf.mxu0 }
 0x4f3   : > { %v1441_v4 = vpop.f32.mrf.mxu0 }
 0x510   : > { %v1571_v43 = vpop.permute.xlu1 %1570 }
 0x511   : > { %v1616_v55 = vsel %vm3233_vm0, %v1945_v18, %v1571_v43 }
 0x512   : > { %1632 = vst [vmem:[%s3139_s6 + $0x10] sm:$0xff] %v1616_v55 }
 0x514   : > { %v1567_v59 = vpop.permute.xlu1 %1566 }
 0x515   : > { %v1614_v52 = vsel %vm3234_vm1, %v1390_v0, %v1567_v59 }
 0x516   : > { %1630 = vst [vmem:[%s3139_s6] sm:$0xff] %v1614_v52  ;;  %v1569_v63 = vpop.permute.xlu0 %1568 }
 0x517   : > { %v1615_v12 = vsel %vm3235_vm2, %v1393_v42, %v1569_v63 }
 0x518   : > { %1631 = vst [vmem:[%s3139_s6 + $0x8] sm:$0xff] %v1615_v12  ;;  %v1573_v36 = vpop.permute.xlu1 %1572 }
 0x519   : > { %v1617_v17 = vsel %vm3236_vm3, %v1946_v10, %v1573_v36 }
 0x51a   : > { %1633 = vst [vmem:[%s3139_s6 + $0x18] sm:$0xff] %v1617_v17 }
 0x520   : > { %v1579_v41 = vpop.permute.xlu0 %1578 }
 0x521   : > { %v1620_v13 = vsel %vm3237_vm4, %v1949_v20, %v1579_v41 }
 0x522   : > { %1636 = vst [vmem:[%s3139_s6 + $0x30] sm:$0xff] %v1620_v13 }
 0x524   : > { %v1575_v51 = vpop.permute.xlu0 %1574  ;;  %v1581_v40 = vpop.permute.xlu1 %1580 }
 0x525   : > { %v1618_v14 = vsel %vm3238_vm5, %v1406_v8, %v1575_v51  ;;  %v1621_v31 = vsel %vm3239_vm6, %v1950_v11, %v1581_v40 }
 0x526   : > { %1634 = vst [vmem:[%s3139_s6 + $0x20] sm:$0xff] %v1618_v14  ;;  %1637 = vst [vmem:[%s3139_s6 + $0x38] sm:$0xff] %v1621_v31 }
 0x528   : > { %v1577_v6 = vpop.permute.xlu1 %1576 }
 0x529   : > { %v1619_v1 = vsel %vm3240_vm7, %v1409_v21, %v1577_v6 }
 0x52a   : > { %1635 = vst [vmem:[%s3139_s6 + $0x28] sm:$0xff] %v1619_v1 }
 0x530   : > { %v1587_v26 = vpop.permute.xlu0 %1586 }
 0x531   : > { %v1624_v28 = vsel %vm3241_vm8, %v1953_v49, %v1587_v26 }
 0x532   : > { %1640 = vst [vmem:[%s3139_s6 + $0x50] sm:$0xff] %v1624_v28 }
 0x534   : > { %v1583_v27 = vpop.permute.xlu0 %1582  ;;  %v1589_v5 = vpop.permute.xlu1 %1588 }
 0x535   : > { %v1622_v50 = vsel %vm3242_vm9, %v1422_v46, %v1583_v27  ;;  %v1625_v35 = vsel %vm3243_vm10, %v1954_v37, %v1589_v5 }
 0x536   : > { %1638 = vst [vmem:[%s3139_s6 + $0x40] sm:$0xff] %v1622_v50  ;;  %1641 = vst [vmem:[%s3139_s6 + $0x58] sm:$0xff] %v1625_v35 }
 0x538   : > { %v1585_v30 = vpop.permute.xlu1 %1584 }
 0x539   : > { %v1623_v48 = vsel %vm3244_vm11, %v1425_v53, %v1585_v30 }
 0x53a   : > { %1639 = vst [vmem:[%s3139_s6 + $0x48] sm:$0xff] %v1623_v48 }
 0x542   : > { %v1591_v61 = vpop.permute.xlu0 %1590 }
 0x543   : > { %v1626_v16 = vsel %vm3245_vm12, %v1438_v33, %v1591_v61 }
 0x544   : > { %1642 = vst [vmem:[%s3139_s6 + $0x60] sm:$0xff] %v1626_v16 }
 0x546   : > { %v1595_v29 = vpop.permute.xlu0 %1594  ;;  %v1593_v56 = vpop.permute.xlu1 %1592 }
 0x547   : > { %v1628_v22 = vsel %vm3246_vm13, %v1957_v32, %v1595_v29  ;;  %v1627_v57 = vsel %vm3247_vm14, %v1441_v4, %v1593_v56 }
 0x548   : > { %1644 = vst [vmem:[%s3139_s6 + $0x70] sm:$0xff] %v1628_v22  ;;  %1643 = vst [vmem:[%s3139_s6 + $0x68] sm:$0xff] %v1627_v57 }
 0x54a   : > { %v1597_v23 = vpop.permute.xlu1 %1596 }
 0x54b   : > { %v1629_v58 = vsel %vm3248_vm15, %v1958_v45, %v1597_v23 }
 0x54c   : > { %1645 = vst [vmem:[%s3139_s6 + $0x78] sm:$0xff] %v1629_v58 }
 0x54d   : > { %2268 = shalt.err (!%p2265_p9)
}
 0x54e   : > { %s2269_s17 = scalar_lea.hbm %s3175_s7, 2048  ;;  %s2273_s24 = scalar_lea.hbm %s3223_s2, 8192 }
 0x54f   : > { %p2270_p13 = scmp.ne.s32.totalorder %s3175_s7, %s2269_s17  ;;  %p2274_p2 = scmp.lt.s32.totalorder %s3175_s7, %s3223_s2 }
 0x550   : > { %p2275_p3 = scmp.lt.s32.totalorder %s2273_s24, %s2269_s17 }
 0x551   : > { %p2271_p1 = pnand %p2270_p13, %p3249_p11 }
 0x552   : > { %p2276_p6 = por %p2275_p3, %p2274_p2 }
 0x553   : > { %p2272_p0 = pneg %p2271_p1 }
 0x555   : > { %p2277_p10 = pnand %p2276_p6, %p2272_p0 }
 0x557   : > { %2280 = shalt.err (!%p2277_p10)
}
 0x558   : > { %s2327_s5 = smov 128   ;;  %s2328_s28 = smov 8  }
 0x559   : > { %2009 = dma.vmem_to_hbm [thread:$0]  (%p3249_p11), %s3177_s30, 2048, %s3175_s7, %s1647_s13, %s2327_s5, %s2327_s5, %s2328_s28  }
 0x55a PF: > { %p2020_p12 = scmp.ge.s32.totalorder %s2319_s12, 2  ;;  %s1675_s6 = sand.u32 1, %s2307_s9  }
 0x55b   : > { %p3250_p4 = scmp.ne.s32.totalorder %s3230_s22, 0  ;;  %s1676_s29 = scalar_lea.sflag [#allocation4], %s1675_s6 }
 0x55d   : > { %p2016_p5 = pnand %p2020_p12, %p3250_p4 }
 0x55f   : > { %p2017_p7 = pneg %p2016_p5 }
 0x561   : > { %2302 = dma.done.wait (%p2017_p7), %s1676_s29, 2048  }
 0x562   : > { %2304 = vsyncadd (%p2017_p7), %s1676_s29, 4294965248  ;;  %p15_p8 = scmp.ge.s32.totalorder %s2369_s15, 6   ;;  %s3251_s9 = smov %s2311_s10 }
 0x563   : > { %s3252_s10 = smov %s2315_s11  ;;  %s3253_s11 = smov %s2381_s18 }
 0x564   : > { %s3254_s12 = smov %s2369_s15  ;;  %17 = sbr.rel (!%p15_p8) target bundleno = 5 (0x5), region = 73 }
 0x569   :  { %1681 = vsyncpa [#allocation3], 1 }
 0x56a   :  { %1683 = vsyncpa [#allocation3 + $0x1], 1 }
 0x56b   :  { %1684 = vsyncpa [#allocation4], 1 }
 0x56c   :  { %1686 = vsyncpa [#allocation4 + $0x1], 1 }

</bundles_post_ra>
